<compile_context>
chip_gen: v7x
topology: tpu7x:2x2x1
jax: 0.10.0
libtpu: 0.0.40
codegen_flags: <defaults>
</compile_context>

<pallas_src>
import jax
import jax.numpy as jnp
from jax import lax
from jax.experimental import pallas as pl
from jax.experimental.pallas import tpu as pltpu

HID = 512
NHEAD = 3      # steer, gas, brake
HEAD_PAD = 8   # pad the 3 heads to one sublane for clean tiling
DEF_TB = 256   # default batch tile (rows per grid step)


def branch_kernel(x_ref, w1_ref, b1_ref, w2_ref, b2_ref, w3_ref, b3_ref,
                  wh_ref, bh_ref, o_ref):
    # fc_1..fc_3: Linear + ReLU. bf16 MXU inputs, f32 accumulation,
    # f32 bias-add + ReLU.
    h = jnp.dot(x_ref[...].astype(jnp.bfloat16), w1_ref[...],
                preferred_element_type=jnp.float32)
    h = jnp.maximum(h + b1_ref[...], 0.0)
    h = jnp.dot(h.astype(jnp.bfloat16), w2_ref[...],
                preferred_element_type=jnp.float32)
    h = jnp.maximum(h + b2_ref[...], 0.0)
    h = jnp.dot(h.astype(jnp.bfloat16), w3_ref[...],
                preferred_element_type=jnp.float32)
    h = jnp.maximum(h + b3_ref[...], 0.0)

    # Fused heads: wh is (8, 512), rows 0..2 = steer/gas/brake, rows 3..7 zero.
    # Contract h's feature dim against wh's dim 1 -> (TB, 8).
    heads = lax.dot_general(
        h.astype(jnp.bfloat16), wh_ref[...],
        dimension_numbers=(((1,), (1,)), ((), ())),
        preferred_element_type=jnp.float32) + bh_ref[...]

    # col 0 -> tanh (steer); cols 1,2 -> relu (gas, brake); cols 3..7 are zero
    # weight/bias, get relu(0)=0 and are sliced off in the wrapper.
    col = lax.broadcasted_iota(jnp.int32, heads.shape, 1)
    o_ref[...] = jnp.where(col == 0, jnp.tanh(heads), jnp.maximum(heads, 0.0))


def branch_block_forward(x, params, *, batch_block=DEF_TB):
    """x: (B, 512) float32 -> (B, 3) float32."""
    B = x.shape[0]
    (w1, b1, w2, b2, w3, b3, wh, bh) = params

    # Batch tile: multiple of 8, no larger than needed; pad B up to a multiple.
    tb = min(batch_block, ((B + 7) // 8) * 8)
    bp = ((B + tb - 1) // tb) * tb
    if bp != B:
        x = jnp.pad(x, ((0, bp - B), (0, 0)))
    nb = bp // tb

    out_padded = pl.pallas_call(
        branch_kernel,
        out_shape=jax.ShapeDtypeStruct((bp, HEAD_PAD), jnp.float32),
        grid_spec=pltpu.PrefetchScalarGridSpec(
            num_scalar_prefetch=0,
            grid=(nb,),
            in_specs=[
                pl.BlockSpec((tb, HID), lambda i: (i, 0)),        # x (streamed)
                pl.BlockSpec((HID, HID), lambda i: (0, 0)),       # w1 (resident)
                pl.BlockSpec((1, HID), lambda i: (0, 0)),         # b1
                pl.BlockSpec((HID, HID), lambda i: (0, 0)),       # w2
                pl.BlockSpec((1, HID), lambda i: (0, 0)),         # b2
                pl.BlockSpec((HID, HID), lambda i: (0, 0)),       # w3
                pl.BlockSpec((1, HID), lambda i: (0, 0)),         # b3
                pl.BlockSpec((HEAD_PAD, HID), lambda i: (0, 0)),  # wh (fused heads)
                pl.BlockSpec((1, HEAD_PAD), lambda i: (0, 0)),    # bh
            ],
            out_specs=pl.BlockSpec((tb, HEAD_PAD), lambda i: (i, 0)),
        ),
        compiler_params=pltpu.CompilerParams(
            dimension_semantics=("parallel",)),
    )(x, w1, b1, w2, b2, w3, b3, wh, bh)

    return out_padded[:B, :NHEAD]


def init_params(key):
    """PyTorch nn.Linear-style init (U(-k, k), k=1/sqrt(fan_in)).
    512x512 weights are stored as (in, out); heads packed as (8, 512)."""
    keys = jax.random.split(key, 8)
    k = 1.0 / jnp.sqrt(jnp.float32(HID))

    def lin(kw, kb, out_dim):
        w = jax.random.uniform(kw, (HID, out_dim), jnp.float32, -k, k)
        b = jax.random.uniform(kb, (1, out_dim), jnp.float32, -k, k)
        return w, b

    w1, b1 = lin(keys[0], keys[1], HID)
    w2, b2 = lin(keys[2], keys[3], HID)
    w3, b3 = lin(keys[4], keys[5], HID)

    wh3 = jax.random.uniform(keys[6], (NHEAD, HID), jnp.float32, -k, k)
    bh3 = jax.random.uniform(keys[7], (NHEAD,), jnp.float32, -k, k)
    wh = jnp.zeros((HEAD_PAD, HID), jnp.float32).at[:NHEAD].set(wh3)
    bh = jnp.zeros((1, HEAD_PAD), jnp.float32).at[0, :NHEAD].set(bh3)

    # Weights in bf16 (f32 accumulation inside the kernel); biases stay f32.
    return (w1.astype(jnp.bfloat16), b1,
            w2.astype(jnp.bfloat16), b2,
            w3.astype(jnp.bfloat16), b3,
            wh.astype(jnp.bfloat16), bh)


def reference_forward(x, params):
    """Pure-JAX reference with the same bf16-input / f32-accum numerics."""
    (w1, b1, w2, b2, w3, b3, wh, bh) = params

    def mm(a, w):
        return jnp.dot(a.astype(jnp.bfloat16), w,
                       preferred_element_type=jnp.float32)

    h = jnp.maximum(mm(x, w1) + b1, 0.0)
    h = jnp.maximum(mm(h, w2) + b2, 0.0)
    h = jnp.maximum(mm(h, w3) + b3, 0.0)
    heads = mm(h, wh.T) + bh
    steer = jnp.tanh(heads[:, 0:1])
    gas = jnp.maximum(heads[:, 1:2], 0.0)
    brake = jnp.maximum(heads[:, 2:3], 0.0)
    return jnp.concatenate([steer, gas, brake], axis=1)


if __name__ == "__main__":
    key = jax.random.PRNGKey(0)
    k_param, k_x1, k_x2 = jax.random.split(key, 3)
    params = init_params(k_param)

    # Small-batch case (single grid step).
    B1 = 8
    x1 = jax.random.normal(k_x1, (B1, HID), jnp.float32)
    out1 = jax.block_until_ready(branch_block_forward(x1, params))
    ref1 = reference_forward(x1, params)
    assert out1.shape == (B1, NHEAD), out1.shape
    assert jnp.allclose(out1, ref1, atol=1e-2, rtol=1e-2), (
        f"max err {jnp.max(jnp.abs(out1 - ref1))}")

    # Multi-step grid + batch padding case (B not a multiple of the tile).
    B2 = 72
    x2 = jax.random.normal(k_x2, (B2, HID), jnp.float32)
    out2 = jax.block_until_ready(branch_block_forward(x2, params, batch_block=32))
    ref2 = reference_forward(x2, params)
    assert out2.shape == (B2, NHEAD), out2.shape
    assert jnp.allclose(out2, ref2, atol=1e-2, rtol=1e-2), (
        f"max err {jnp.max(jnp.abs(out2 - ref2))}")

    print("KERNEL_OK")
</pallas_src>

<mosaic_0001>
module attributes {stable_mosaic.version = 11 : i64} {
  func.func @branch_kernel(%arg0: i32, %arg1: memref<8x512xf32, #tpu.memory_space<vmem>>, %arg2: memref<512x512xbf16, #tpu.memory_space<vmem>>, %arg3: memref<1x512xf32, #tpu.memory_space<vmem>>, %arg4: memref<512x512xbf16, #tpu.memory_space<vmem>>, %arg5: memref<1x512xf32, #tpu.memory_space<vmem>>, %arg6: memref<512x512xbf16, #tpu.memory_space<vmem>>, %arg7: memref<1x512xf32, #tpu.memory_space<vmem>>, %arg8: memref<8x512xbf16, #tpu.memory_space<vmem>>, %arg9: memref<1x8xf32, #tpu.memory_space<vmem>>, %arg10: memref<8x8xf32, #tpu.memory_space<vmem>>) attributes {dimension_semantics = [#tpu.dimension_semantics<parallel>], iteration_bounds = array<i64: 1>, scalar_prefetch = 0 : i64, scratch_operands = 0 : i64, tpu.core_type = #tpu.core_type<tc>, window_params = [{transform_indices = @transform_0, window_bounds = array<i64: 8, 512>}, {pipeline_mode = #tpu.pipeline_mode<synchronous>, transform_indices = @transform_1, window_bounds = array<i64: 512, 512>}, {pipeline_mode = #tpu.pipeline_mode<synchronous>, transform_indices = @transform_2, window_bounds = array<i64: 1, 512>}, {pipeline_mode = #tpu.pipeline_mode<synchronous>, transform_indices = @transform_3, window_bounds = array<i64: 512, 512>}, {pipeline_mode = #tpu.pipeline_mode<synchronous>, transform_indices = @transform_4, window_bounds = array<i64: 1, 512>}, {pipeline_mode = #tpu.pipeline_mode<synchronous>, transform_indices = @transform_5, window_bounds = array<i64: 512, 512>}, {pipeline_mode = #tpu.pipeline_mode<synchronous>, transform_indices = @transform_6, window_bounds = array<i64: 1, 512>}, {pipeline_mode = #tpu.pipeline_mode<synchronous>, transform_indices = @transform_7, window_bounds = array<i64: 8, 512>}, {pipeline_mode = #tpu.pipeline_mode<synchronous>, transform_indices = @transform_8, window_bounds = array<i64: 1, 8>}, {transform_indices = @transform_9, window_bounds = array<i64: 8, 8>}]} {
    %c0 = arith.constant 0 : index
    %c0_0 = arith.constant 0 : index
    %0 = vector.load %arg1[%c0, %c0_0] : memref<8x512xf32, #tpu.memory_space<vmem>>, vector<8x512xf32>
    %1 = arith.truncf %0 : vector<8x512xf32> to vector<8x512xbf16>
    %c0_1 = arith.constant 0 : index
    %c0_2 = arith.constant 0 : index
    %2 = vector.load %arg2[%c0_1, %c0_2] : memref<512x512xbf16, #tpu.memory_space<vmem>>, vector<512x512xbf16>
    %cst = arith.constant dense<0.000000e+00> : vector<8x512xf32>
    %3 = tpu.matmul %1, %2, %cst {dimension_numbers = #tpu.dot_dimension_numbers<[1], [0], [0], [1], [0, 0, 1, 1], [], []>} : vector<8x512xbf16>, vector<512x512xbf16>, vector<8x512xf32> -> vector<8x512xf32>
    %c0_3 = arith.constant 0 : index
    %c0_4 = arith.constant 0 : index
    %4 = vector.load %arg3[%c0_3, %c0_4] : memref<1x512xf32, #tpu.memory_space<vmem>>, vector<1x512xf32>
    %5 = vector.broadcast %4 : vector<1x512xf32> to vector<8x512xf32>
    %6 = arith.addf %3, %5 : vector<8x512xf32>
    %cst_5 = arith.constant 0.000000e+00 : f32
    %7 = vector.broadcast %cst_5 : f32 to vector<8x512xf32>
    %8 = arith.maximumf %6, %7 : vector<8x512xf32>
    %9 = arith.truncf %8 : vector<8x512xf32> to vector<8x512xbf16>
    %c0_6 = arith.constant 0 : index
    %c0_7 = arith.constant 0 : index
    %10 = vector.load %arg4[%c0_6, %c0_7] : memref<512x512xbf16, #tpu.memory_space<vmem>>, vector<512x512xbf16>
    %cst_8 = arith.constant dense<0.000000e+00> : vector<8x512xf32>
    %11 = tpu.matmul %9, %10, %cst_8 {dimension_numbers = #tpu.dot_dimension_numbers<[1], [0], [0], [1], [0, 0, 1, 1], [], []>} : vector<8x512xbf16>, vector<512x512xbf16>, vector<8x512xf32> -> vector<8x512xf32>
    %c0_9 = arith.constant 0 : index
    %c0_10 = arith.constant 0 : index
    %12 = vector.load %arg5[%c0_9, %c0_10] : memref<1x512xf32, #tpu.memory_space<vmem>>, vector<1x512xf32>
    %13 = vector.broadcast %12 : vector<1x512xf32> to vector<8x512xf32>
    %14 = arith.addf %11, %13 : vector<8x512xf32>
    %cst_11 = arith.constant 0.000000e+00 : f32
    %15 = vector.broadcast %cst_11 : f32 to vector<8x512xf32>
    %16 = arith.maximumf %14, %15 : vector<8x512xf32>
    %17 = arith.truncf %16 : vector<8x512xf32> to vector<8x512xbf16>
    %c0_12 = arith.constant 0 : index
    %c0_13 = arith.constant 0 : index
    %18 = vector.load %arg6[%c0_12, %c0_13] : memref<512x512xbf16, #tpu.memory_space<vmem>>, vector<512x512xbf16>
    %cst_14 = arith.constant dense<0.000000e+00> : vector<8x512xf32>
    %19 = tpu.matmul %17, %18, %cst_14 {dimension_numbers = #tpu.dot_dimension_numbers<[1], [0], [0], [1], [0, 0, 1, 1], [], []>} : vector<8x512xbf16>, vector<512x512xbf16>, vector<8x512xf32> -> vector<8x512xf32>
    %c0_15 = arith.constant 0 : index
    %c0_16 = arith.constant 0 : index
    %20 = vector.load %arg7[%c0_15, %c0_16] : memref<1x512xf32, #tpu.memory_space<vmem>>, vector<1x512xf32>
    %21 = vector.broadcast %20 : vector<1x512xf32> to vector<8x512xf32>
    %22 = arith.addf %19, %21 : vector<8x512xf32>
    %cst_17 = arith.constant 0.000000e+00 : f32
    %23 = vector.broadcast %cst_17 : f32 to vector<8x512xf32>
    %24 = arith.maximumf %22, %23 : vector<8x512xf32>
    %25 = arith.truncf %24 : vector<8x512xf32> to vector<8x512xbf16>
    %c0_18 = arith.constant 0 : index
    %c0_19 = arith.constant 0 : index
    %26 = vector.load %arg8[%c0_18, %c0_19] : memref<8x512xbf16, #tpu.memory_space<vmem>>, vector<8x512xbf16>
    %cst_20 = arith.constant dense<0.000000e+00> : vector<8x8xf32>
    %27 = tpu.matmul %25, %26, %cst_20 {dimension_numbers = #tpu.dot_dimension_numbers<[1], [1], [0], [0], [0, 0, 1, 0], [], []>} : vector<8x512xbf16>, vector<8x512xbf16>, vector<8x8xf32> -> vector<8x8xf32>
    %c0_21 = arith.constant 0 : index
    %c0_22 = arith.constant 0 : index
    %28 = vector.load %arg9[%c0_21, %c0_22] : memref<1x8xf32, #tpu.memory_space<vmem>>, vector<1x8xf32>
    %29 = vector.broadcast %28 : vector<1x8xf32> to vector<8x8xf32>
    %30 = arith.addf %27, %29 : vector<8x8xf32>
    %31 = tpu.iota {dimensions = array<i32: 1>} : vector<8x8xi32>
    %c0_i32 = arith.constant 0 : i32
    %32 = vector.broadcast %c0_i32 : i32 to vector<8x8xi32>
    %33 = arith.cmpi eq, %31, %32 : vector<8x8xi32>
    %34 = math.tanh %30 : vector<8x8xf32>
    %cst_23 = arith.constant 0.000000e+00 : f32
    %35 = vector.broadcast %cst_23 : f32 to vector<8x8xf32>
    %36 = arith.maximumf %30, %35 : vector<8x8xf32>
    %37 = arith.select %33, %34, %36 : vector<8x8xi1>, vector<8x8xf32>
    %c0_24 = arith.constant 0 : index
    %c0_25 = arith.constant 0 : index
    %38 = vector.load %arg10[%c0_24, %c0_25] : memref<8x8xf32, #tpu.memory_space<vmem>>, vector<8x8xf32>
    tpu.vector_store %arg10[%c0_24, %c0_25], %37 {strides = array<i32>} : memref<8x8xf32, #tpu.memory_space<vmem>>, vector<8x8xf32>,
    return
  }
  func.func @transform_0(%arg0: i32) -> (i32, i32) {
    %c0_i32 = arith.constant 0 : i32
    %c0_i32_0 = arith.constant 0 : i32
    return %arg0, %c0_i32 : i32, i32
  }
  func.func @transform_1(%arg0: i32) -> (i32, i32) {
    %c0_i32 = arith.constant 0 : i32
    %c0_i32_0 = arith.constant 0 : i32
    %c0_i32_1 = arith.constant 0 : i32
    return %c0_i32, %c0_i32_0 : i32, i32
  }
  func.func @transform_2(%arg0: i32) -> (i32, i32) {
    %c0_i32 = arith.constant 0 : i32
    %c0_i32_0 = arith.constant 0 : i32
    %c0_i32_1 = arith.constant 0 : i32
    return %c0_i32, %c0_i32_0 : i32, i32
  }
  func.func @transform_3(%arg0: i32) -> (i32, i32) {
    %c0_i32 = arith.constant 0 : i32
    %c0_i32_0 = arith.constant 0 : i32
    %c0_i32_1 = arith.constant 0 : i32
    return %c0_i32, %c0_i32_0 : i32, i32
  }
  func.func @transform_4(%arg0: i32) -> (i32, i32) {
    %c0_i32 = arith.constant 0 : i32
    %c0_i32_0 = arith.constant 0 : i32
    %c0_i32_1 = arith.constant 0 : i32
    return %c0_i32, %c0_i32_0 : i32, i32
  }
  func.func @transform_5(%arg0: i32) -> (i32, i32) {
    %c0_i32 = arith.constant 0 : i32
    %c0_i32_0 = arith.constant 0 : i32
    %c0_i32_1 = arith.constant 0 : i32
    return %c0_i32, %c0_i32_0 : i32, i32
  }
  func.func @transform_6(%arg0: i32) -> (i32, i32) {
    %c0_i32 = arith.constant 0 : i32
    %c0_i32_0 = arith.constant 0 : i32
    %c0_i32_1 = arith.constant 0 : i32
    return %c0_i32, %c0_i32_0 : i32, i32
  }
  func.func @transform_7(%arg0: i32) -> (i32, i32) {
    %c0_i32 = arith.constant 0 : i32
    %c0_i32_0 = arith.constant 0 : i32
    %c0_i32_1 = arith.constant 0 : i32
    return %c0_i32, %c0_i32_0 : i32, i32
  }
  func.func @transform_8(%arg0: i32) -> (i32, i32) {
    %c0_i32 = arith.constant 0 : i32
    %c0_i32_0 = arith.constant 0 : i32
    %c0_i32_1 = arith.constant 0 : i32
    return %c0_i32, %c0_i32_0 : i32, i32
  }
  func.func @transform_9(%arg0: i32) -> (i32, i32) {
    %c0_i32 = arith.constant 0 : i32
    %c0_i32_0 = arith.constant 0 : i32
    return %arg0, %c0_i32 : i32, i32
  }
}

</mosaic_0001>

<bundles_post_ra>
// kernel: tpu_custom_call.1
= control target key start
LH: loop header
LB: loop body
LE: loop exit
PB: predicated region body
PF: predicated region fallthrough
CT: control target
= control target key end

     0   :  { %14 = vsyncpa [#allocation3], 0  ;;  %s4477_s0 = inlined_call_operand.hbm [shape: f32[8,512], index: 0, kind: input, shape index: {}]   ;;  %s4478_s1 = inlined_call_operand.hbm [shape: bf16[512,512], index: 1, kind: input, shape index: {}]   ;;  %s4479_s2 = inlined_call_operand.vmem [shape: f32[1,512], index: 2, kind: input, shape index: {}]   ;;  %s4480_s3 = inlined_call_operand.hbm [shape: bf16[512,512], index: 3, kind: input, shape index: {}]   ;;  %s4481_s4 = inlined_call_operand.vmem [shape: f32[1,512], index: 4, kind: input, shape index: {}]   ;;  %s4482_s5 = inlined_call_operand.hbm [shape: bf16[512,512], index: 5, kind: input, shape index: {}]   ;;  %s4483_s6 = inlined_call_operand.hbm [shape: f32[1,512], index: 6, kind: input, shape index: {}]   ;;  %s4484_s7 = inlined_call_operand.vmem [shape: bf16[8,512], index: 7, kind: input, shape index: {}]   ;;  %s4485_s8 = inlined_call_operand.vmem [shape: f32[1,8], index: 8, kind: input, shape index: {}]   ;;  %s4486_s9 = inlined_call_operand.hbm [shape: f32[8,8], index: 9, kind: output, shape index: {}]  }
   0x1   :  { %15 = vsyncpa [#allocation6], 0 }
   0x2   :  { %16 = vsyncpa [#allocation9], 0 }
   0x3   :  { %17 = vsyncpa [#allocation4], 0  ;;  %s4277_s30 = smov [#allocation5]   ;;  %s4137_s13 = scalar_lea.hbm %s4478_s1, 16384 }
   0x4   :  { %s33_s10 = sshll.u32 %s4277_s30, 4  ;;  %p4138_p0 = scmp.ne.s32.totalorder %s4478_s1, %s4137_s13  ;;  %s34_s10 = int_to_ptr.vmem [resolvable:$true] %s33_s10 }
   0x5   :  { %p4141_p1 = scmp.lt.u32.totalorder %s4137_s13, %s4478_s1 }
   0x7   :  { %p4143_p2 = pnand %p4141_p1, %p4138_p0 }
   0x9   :  { %4146 = shalt.err (!%p4143_p2)
}
   0xa   :  { %s4147_s18 = scalar_lea.vmem %s34_s10, 16384  ;;  %p4152_p4 = scmp.lt.s32.totalorder %s34_s10, %s34_s10 }
   0xb   :  { %p4148_p3 = scmp.ne.s32.totalorder %s34_s10, %s4147_s18  ;;  %p4153_p5 = scmp.lt.s32.totalorder %s4147_s18, %s4147_s18 }
   0xd   :  { %p4154_p6 = por %p4153_p5, %p4152_p4 }
   0xf   :  { %p4155_p7 = pnand %p4154_p6, %p4148_p3 }
  0x11   :  { %4158 = shalt.err (!%p4155_p7)
}
  0x12   :  { %s4278_s19 = smov 256   ;;  %s4279_s20 = smov 16  }
  0x13   :  { %39 = dma.hbm_to_vmem [thread:$0]  %s4478_s1, 16384, %s34_s10, [#allocation6], %s4278_s19, %s4278_s19, %s4279_s20  }
  0x14   :  { %s4280_s23 = smov [#allocation8]   ;;  %s4281_s25 = smov [#allocation2]  }
  0x15   :  { %s61_s24 = sshll.u32 %s4280_s23, 4  ;;  %s24_s26 = sshll.u32 %s4281_s25, 4  ;;  %s62_s24 = int_to_ptr.vmem [resolvable:$true] %s61_s24  ;;  %s25_s26 = int_to_ptr.vmem [resolvable:$true] %s24_s26 }
  0x16   :  { %s4159_s29 = scalar_lea.hbm %s4482_s5, 16384 }
  0x17   :  { %p4160_p8 = scmp.ne.s32.totalorder %s4482_s5, %s4159_s29  ;;  %p4163_p9 = scmp.lt.u32.totalorder %s4159_s29, %s4482_s5 }
  0x19   :  { %p4165_p10 = pnand %p4163_p9, %p4160_p8 }
  0x1b   :  { %4168 = shalt.err (!%p4165_p10)
}
  0x1c   :  { %s4169_s1 = scalar_lea.vmem %s62_s24, 16384  ;;  %p4174_p12 = scmp.lt.s32.totalorder %s62_s24, %s62_s24 }
  0x1d   :  { %p4170_p11 = scmp.ne.s32.totalorder %s62_s24, %s4169_s1  ;;  %p4175_p13 = scmp.lt.s32.totalorder %s4169_s1, %s4169_s1 }
  0x1f   :  { %p4176_p0 = por %p4175_p13, %p4174_p12 }
  0x21   :  { %p4177_p1 = pnand %p4176_p0, %p4170_p11 }
  0x23   :  { %4180 = shalt.err (!%p4177_p1)
}
  0x24   :  { %67 = dma.hbm_to_vmem [thread:$0]  %s4482_s5, 16384, %s62_s24, [#allocation9], %s4278_s19, %s4278_s19, %s4279_s20  }
  0x25   :  { %s4181_s17 = scalar_lea.hbm %s4477_s0, 512 }
  0x26   :  { %p4182_p2 = scmp.ne.s32.totalorder %s4477_s0, %s4181_s17  ;;  %p4185_p3 = scmp.lt.u32.totalorder %s4181_s17, %s4477_s0 }
  0x28   :  { %p4187_p4 = pnand %p4185_p3, %p4182_p2 }
  0x2a   :  { %4190 = shalt.err (!%p4187_p4)
}
  0x2b   :  { %s4191_s25 = scalar_lea.vmem %s25_s26, 512  ;;  %p4196_p6 = scmp.lt.s32.totalorder %s25_s26, %s25_s26 }
  0x2c   :  { %p4192_p5 = scmp.ne.s32.totalorder %s25_s26, %s4191_s25  ;;  %p4197_p7 = scmp.lt.s32.totalorder %s4191_s25, %s4191_s25 }
  0x2e   :  { %p4198_p8 = por %p4197_p7, %p4196_p6 }
  0x30   :  { %p4199_p9 = pnand %p4198_p8, %p4192_p5 }
  0x32   :  { %4202 = shalt.err (!%p4199_p9)
}
  0x33   :  { %27 = dma.hbm_to_vmem [thread:$0]  %s4477_s0, 512, %s25_s26, [#allocation3]  }
  0x34   :  { %s4282_s27 = smov [#allocation7]   ;;  %s4283_s29 = smov [#allocation10]  }
  0x35   :  { %s47_s28 = sshll.u32 %s4282_s27, 4  ;;  %s74_s30 = sshll.u32 %s4283_s29, 4  ;;  %s48_s28 = int_to_ptr.vmem [resolvable:$true] %s47_s28  ;;  %s75_s30 = int_to_ptr.vmem [resolvable:$true] %s74_s30 }
  0x36   :  { %s4203_s13 = scalar_lea.hbm %s4480_s3, 16384 }
  0x37   :  { %p4204_p10 = scmp.ne.s32.totalorder %s4480_s3, %s4203_s13  ;;  %p4207_p11 = scmp.lt.u32.totalorder %s4203_s13, %s4480_s3 }
  0x39   :  { %p4209_p12 = pnand %p4207_p11, %p4204_p10 }
  0x3b   :  { %4212 = shalt.err (!%p4209_p12)
}
  0x3c   :  { %s4213_s0 = scalar_lea.vmem %s48_s28, 16384  ;;  %p4218_p0 = scmp.lt.s32.totalorder %s48_s28, %s48_s28 }
  0x3d   :  { %p4214_p13 = scmp.ne.s32.totalorder %s48_s28, %s4213_s0  ;;  %p4219_p1 = scmp.lt.s32.totalorder %s4213_s0, %s4213_s0 }
  0x3f   :  { %p4220_p2 = por %p4219_p1, %p4218_p0 }
  0x41   :  { %p4221_p3 = pnand %p4220_p2, %p4214_p13 }
  0x43   :  { %4224 = shalt.err (!%p4221_p3)
}
  0x44   :  { %53 = dma.hbm_to_vmem [thread:$0]  %s4480_s3, 16384, %s48_s28, [#allocation6], %s4278_s19, %s4278_s19, %s4279_s20  }
  0x45   :  { %s4225_s21 = scalar_lea.hbm %s4483_s6, 64 }
  0x46   :  { %p4226_p4 = scmp.ne.s32.totalorder %s4483_s6, %s4225_s21  ;;  %p4229_p5 = scmp.lt.u32.totalorder %s4225_s21, %s4483_s6 }
  0x48   :  { %p4231_p6 = pnand %p4229_p5, %p4226_p4 }
  0x4a   :  { %4234 = shalt.err (!%p4231_p6)
}
  0x4b   :  { %s4235_s24 = scalar_lea.vmem %s75_s30, 64  ;;  %p4240_p8 = scmp.lt.s32.totalorder %s75_s30, %s75_s30 }
  0x4c   :  { %p4236_p7 = scmp.ne.s32.totalorder %s75_s30, %s4235_s24  ;;  %p4241_p9 = scmp.lt.s32.totalorder %s4235_s24, %s4235_s24 }
  0x4e   :  { %p4242_p10 = por %p4241_p9, %p4240_p8 }
  0x50   :  { %p4243_p11 = pnand %p4242_p10, %p4236_p7 }
  0x52   :  { %4246 = shalt.err (!%p4243_p11)
}
  0x53   :  { %77 = dma.hbm_to_vmem [thread:$0]  %s4483_s6, 64, %s75_s30, [#allocation9]  }
  0x54   :  { %4269 = dma.done.wait [#allocation3], 512  }
  0x55   :  { %4270 = vsyncadd [#allocation3], 4294966784 }
  0x56   :  { %4271 = dma.done.wait [#allocation6], 32768  }
  0x57   :  { %4272 = vsyncadd [#allocation6], 4294934528 }
  0x58   :  { %4273 = dma.done.wait [#allocation9], 16448  }
  0x59   :  { %4274 = vsyncadd [#allocation9], 4294950848  ;;  %v3555_v0 = vld [vmem:[#allocation5 + $0x4] ss:$16 sps:$4 sm:$0xff]   ;;  %v3557_v1 = vld [vmem:[#allocation5 + $0xc] ss:$16 sps:$4 sm:$0xff]  }
  0x5a   :  { %896 = vmatprep.subr.bf16.mxu0 %v3555_v0  ;;  %v3559_v2 = vld [vmem:[#allocation5] ss:$16 sps:$4 sm:$0xff]   ;;  %v3560_v3 = vld [vmem:[#allocation5 + $0x8] ss:$16 sps:$4 sm:$0xff]   ;;  %978 = vmatprep.subr.bf16.mxu1 %v3557_v1  ;;  %v3561_v4 = vld [vmem:[#allocation5 + $0x24] ss:$16 sps:$4 sm:$0xff]  }
  0x5b   :  { %897 = vmatpush1.bf16.msra.mxu0 %v3559_v2  ;;  %979 = vmatpush1.bf16.msra.mxu1 %v3560_v3  ;;  %v3563_v5 = vld [vmem:[#allocation5 + $0x2c] ss:$16 sps:$4 sm:$0xff]   ;;  %v3565_v6 = vld [vmem:[#allocation5 + $0x20] ss:$16 sps:$4 sm:$0xff]   ;;  %v3566_v7 = vld [vmem:[#allocation5 + $0x28] ss:$16 sps:$4 sm:$0xff]  }
  0x5c   :  { %898 = vmatprep.subr.bf16.mxu0 %v3561_v4  ;;  %980 = vmatprep.subr.bf16.mxu1 %v3563_v5  ;;  %v3567_v8 = vld [vmem:[#allocation5 + $0x44] ss:$16 sps:$4 sm:$0xff]   ;;  %v3569_v9 = vld [vmem:[#allocation5 + $0x4c] ss:$16 sps:$4 sm:$0xff]   ;;  %v3571_v10 = vld [vmem:[#allocation5 + $0x40] ss:$16 sps:$4 sm:$0xff]  }
  0x5d   :  { %v3572_v11 = vld [vmem:[#allocation5 + $0x48] ss:$16 sps:$4 sm:$0xff]   ;;  %v3573_v12 = vld [vmem:[#allocation5 + $0x64] ss:$16 sps:$4 sm:$0xff]   ;;  %v3575_v13 = vld [vmem:[#allocation5 + $0x6c] ss:$16 sps:$4 sm:$0xff]  }
  0x5e   :  { %v3577_v14 = vld [vmem:[#allocation5 + $0x60] ss:$16 sps:$4 sm:$0xff]   ;;  %v3578_v15 = vld [vmem:[#allocation5 + $0x68] ss:$16 sps:$4 sm:$0xff]   ;;  %v3579_v16 = vld [vmem:[#allocation5 + $0x84] ss:$16 sps:$4 sm:$0xff]  }
  0x5f   :  { %899 = vmatpush1.bf16.msra.mxu0 %v3565_v6  ;;  %981 = vmatpush1.bf16.msra.mxu1 %v3566_v7  ;;  %v3581_v17 = vld [vmem:[#allocation5 + $0x8c] ss:$16 sps:$4 sm:$0xff]   ;;  %v3583_v18 = vld [vmem:[#allocation5 + $0x80] ss:$16 sps:$4 sm:$0xff]   ;;  %v3584_v19 = vld [vmem:[#allocation5 + $0x88] ss:$16 sps:$4 sm:$0xff]  }
  0x60   :  { %900 = vmatprep.subr.bf16.mxu0 %v3567_v8  ;;  %982 = vmatprep.subr.bf16.mxu1 %v3569_v9  ;;  %v3585_v20 = vld [vmem:[#allocation5 + $0xa4] ss:$16 sps:$4 sm:$0xff]   ;;  %v3587_v21 = vld [vmem:[#allocation5 + $0xac] ss:$16 sps:$4 sm:$0xff]   ;;  %v3589_v22 = vld [vmem:[#allocation5 + $0xa0] ss:$16 sps:$4 sm:$0xff]  }
  0x61   :  { %v3590_v23 = vld [vmem:[#allocation5 + $0xa8] ss:$16 sps:$4 sm:$0xff]   ;;  %v3591_v24 = vld [vmem:[#allocation5 + $0xc4] ss:$16 sps:$4 sm:$0xff]   ;;  %v3593_v25 = vld [vmem:[#allocation5 + $0xcc] ss:$16 sps:$4 sm:$0xff]  }
  0x62   :  { %v3595_v26 = vld [vmem:[#allocation5 + $0xc0] ss:$16 sps:$4 sm:$0xff]   ;;  %v3596_v27 = vld [vmem:[#allocation5 + $0xc8] ss:$16 sps:$4 sm:$0xff]   ;;  %v3597_v28 = vld [vmem:[#allocation5 + $0xe4] ss:$16 sps:$4 sm:$0xff]  }
  0x63   :  { %901 = vmatpush1.bf16.msra.mxu0 %v3571_v10  ;;  %983 = vmatpush1.bf16.msra.mxu1 %v3572_v11  ;;  %v3599_v29 = vld [vmem:[#allocation5 + $0xec] ss:$16 sps:$4 sm:$0xff]   ;;  %v3601_v30 = vld [vmem:[#allocation5 + $0xe0] ss:$16 sps:$4 sm:$0xff]   ;;  %v3602_v31 = vld [vmem:[#allocation5 + $0xe8] ss:$16 sps:$4 sm:$0xff]  }
  0x64   :  { %902 = vmatprep.subr.bf16.mxu0 %v3573_v12  ;;  %984 = vmatprep.subr.bf16.mxu1 %v3575_v13  ;;  %v3603_v32 = vld [vmem:[#allocation5 + $0x104] ss:$16 sps:$4 sm:$0xff]   ;;  %v3605_v33 = vld [vmem:[#allocation5 + $0x10c] ss:$16 sps:$4 sm:$0xff]   ;;  %v3607_v34 = vld [vmem:[#allocation5 + $0x100] ss:$16 sps:$4 sm:$0xff]  }
  0x65   :  { %v3608_v35 = vld [vmem:[#allocation5 + $0x108] ss:$16 sps:$4 sm:$0xff]   ;;  %v3609_v36 = vld [vmem:[#allocation5 + $0x124] ss:$16 sps:$4 sm:$0xff]   ;;  %v3611_v37 = vld [vmem:[#allocation5 + $0x12c] ss:$16 sps:$4 sm:$0xff]  }
  0x66   :  { %v3613_v38 = vld [vmem:[#allocation5 + $0x120] ss:$16 sps:$4 sm:$0xff]   ;;  %v3614_v39 = vld [vmem:[#allocation5 + $0x128] ss:$16 sps:$4 sm:$0xff]   ;;  %v3615_v40 = vld [vmem:[#allocation5 + $0x144] ss:$16 sps:$4 sm:$0xff]  }
  0x67   :  { %903 = vmatpush1.bf16.msra.mxu0 %v3577_v14  ;;  %985 = vmatpush1.bf16.msra.mxu1 %v3578_v15  ;;  %v3617_v41 = vld [vmem:[#allocation5 + $0x14c] ss:$16 sps:$4 sm:$0xff]   ;;  %v3619_v42 = vld [vmem:[#allocation5 + $0x140] ss:$16 sps:$4 sm:$0xff]   ;;  %v3620_v43 = vld [vmem:[#allocation5 + $0x148] ss:$16 sps:$4 sm:$0xff]  }
  0x68   :  { %904 = vmatprep.subr.bf16.mxu0 %v3579_v16  ;;  %986 = vmatprep.subr.bf16.mxu1 %v3581_v17  ;;  %v3621_v44 = vld [vmem:[#allocation5 + $0x164] ss:$16 sps:$4 sm:$0xff]   ;;  %v3623_v45 = vld [vmem:[#allocation5 + $0x16c] ss:$16 sps:$4 sm:$0xff]   ;;  %v3625_v47 = vld [vmem:[#allocation5 + $0x160] ss:$16 sps:$4 sm:$0xff]  }
  0x69   :  { %v99_v46 = vld [vmem:[#allocation2 + $0x8] sm:$0xff]  ;;  %v3627_v50 = vld [vmem:[#allocation5 + $0x184] ss:$16 sps:$4 sm:$0xff]   ;;  %v3631_v52 = vld [vmem:[#allocation5 + $0x180] ss:$16 sps:$4 sm:$0xff]   ;;  %s4284_s12 = smov [#allocation11]  }
  0x6a   :  { %v103_v48 = vpack.c.bf16 %v99_v46, %v99_v46  ;;  %v3626_v49 = vld [vmem:[#allocation5 + $0x168] ss:$16 sps:$4 sm:$0xff]   ;;  %v3629_v51 = vld [vmem:[#allocation5 + $0x18c] ss:$16 sps:$4 sm:$0xff]   ;;  %v3633_v54 = vld [vmem:[#allocation5 + $0x1a4] ss:$16 sps:$4 sm:$0xff]  }
  0x6b   :  { %905 = vmatpush1.bf16.msra.mxu0 %v3583_v18  ;;  %987 = vmatpush1.bf16.msra.mxu1 %v3584_v19  ;;  %v3632_v53 = vld [vmem:[#allocation5 + $0x188] ss:$16 sps:$4 sm:$0xff]   ;;  %v3635_v55 = vld [vmem:[#allocation5 + $0x1ac] ss:$16 sps:$4 sm:$0xff]   ;;  %v3637_v56 = vld [vmem:[#allocation5 + $0x1a0] ss:$16 sps:$4 sm:$0xff]  }
  0x6c   :  { %906 = vmatprep.subr.bf16.mxu0 %v3585_v20  ;;  %988 = vmatprep.subr.bf16.mxu1 %v3587_v21  ;;  %v3638_v57 = vld [vmem:[#allocation5 + $0x1a8] ss:$16 sps:$4 sm:$0xff]   ;;  %v3639_v58 = vld [vmem:[#allocation5 + $0x1c4] ss:$16 sps:$4 sm:$0xff]   ;;  %v3641_v59 = vld [vmem:[#allocation5 + $0x1cc] ss:$16 sps:$4 sm:$0xff]  }
  0x6d   :  { %928 = vmatprep.mubr.bf16.mxu0 %v103_v48  ;;  %1010 = vmatprep.mubr.bf16.mxu1 %v103_v48  ;;  %v3643_v60 = vld [vmem:[#allocation5 + $0x1c0] ss:$16 sps:$4 sm:$0xff]   ;;  %v3644_v61 = vld [vmem:[#allocation5 + $0x1c8] ss:$16 sps:$4 sm:$0xff]   ;;  %v3645_v62 = vld [vmem:[#allocation5 + $0x1e4] ss:$16 sps:$4 sm:$0xff]  }
  0x6e   :  { %v3647_v63 = vld [vmem:[#allocation5 + $0x1ec] ss:$16 sps:$4 sm:$0xff]   ;;  %v3649_v0 = vld [vmem:[#allocation5 + $0x1e0] ss:$16 sps:$4 sm:$0xff]   ;;  %v3650_v1 = vld [vmem:[#allocation5 + $0x1e8] ss:$16 sps:$4 sm:$0xff]  }
  0x6f   :  { %907 = vmatpush1.bf16.msra.mxu0 %v3589_v22  ;;  %989 = vmatpush1.bf16.msra.mxu1 %v3590_v23  ;;  %v98_v2 = vld [vmem:[#allocation2] sm:$0xff]  ;;  %v3656_v4 = vld [vmem:[#allocation5 + $0x20c] ss:$16 sps:$4 sm:$0xff]   ;;  %v3654_v7 = vld [vmem:[#allocation5 + $0x208] ss:$16 sps:$4 sm:$0xff]   ;;  %s3109_s13 = sshll.u32 %s4284_s12, 4  ;;  %s3110_s13 = int_to_ptr.vmem [resolvable:$true] %s3109_s13 }
  0x70   :  { %908 = vmatprep.subr.bf16.mxu0 %v3591_v24  ;;  %990 = vmatprep.subr.bf16.mxu1 %v3593_v25  ;;  %v3653_v3 = vld [vmem:[#allocation5 + $0x204] ss:$16 sps:$4 sm:$0xff]   ;;  %v102_v5 = vpack.c.bf16 %v98_v2, %v98_v2  ;;  %v3651_v6 = vld [vmem:[#allocation5 + $0x200] ss:$16 sps:$4 sm:$0xff]   ;;  %v3662_v9 = vld [vmem:[#allocation5 + $0x22c] ss:$16 sps:$4 sm:$0xff]   ;;  %p4252_p13 = scmp.lt.s32.totalorder %s3110_s13, %s3110_s13 }
  0x71   :  { %v3659_v8 = vld [vmem:[#allocation5 + $0x224] ss:$16 sps:$4 sm:$0xff]   ;;  %v3657_v10 = vld [vmem:[#allocation5 + $0x220] ss:$16 sps:$4 sm:$0xff]   ;;  %v3660_v11 = vld [vmem:[#allocation5 + $0x228] ss:$16 sps:$4 sm:$0xff]  }
  0x72   :  { %v3665_v12 = vld [vmem:[#allocation5 + $0x244] ss:$16 sps:$4 sm:$0xff]   ;;  %v3668_v13 = vld [vmem:[#allocation5 + $0x24c] ss:$16 sps:$4 sm:$0xff]   ;;  %v3663_v14 = vld [vmem:[#allocation5 + $0x240] ss:$16 sps:$4 sm:$0xff]  }
  0x73   :  { %909 = vmatpush1.bf16.msra.mxu0 %v3595_v26  ;;  %991 = vmatpush1.bf16.msra.mxu1 %v3596_v27  ;;  %v3666_v15 = vld [vmem:[#allocation5 + $0x248] ss:$16 sps:$4 sm:$0xff]   ;;  %v3671_v16 = vld [vmem:[#allocation5 + $0x264] ss:$16 sps:$4 sm:$0xff]   ;;  %v3674_v17 = vld [vmem:[#allocation5 + $0x26c] ss:$16 sps:$4 sm:$0xff]  }
  0x74   :  { %910 = vmatprep.subr.bf16.mxu0 %v3597_v28  ;;  %992 = vmatprep.subr.bf16.mxu1 %v3599_v29  ;;  %v3669_v18 = vld [vmem:[#allocation5 + $0x260] ss:$16 sps:$4 sm:$0xff]   ;;  %v3672_v19 = vld [vmem:[#allocation5 + $0x268] ss:$16 sps:$4 sm:$0xff]   ;;  %v3677_v20 = vld [vmem:[#allocation5 + $0x284] ss:$16 sps:$4 sm:$0xff]  }
  0x75   :  { %v3680_v21 = vld [vmem:[#allocation5 + $0x28c] ss:$16 sps:$4 sm:$0xff]   ;;  %v3675_v22 = vld [vmem:[#allocation5 + $0x280] ss:$16 sps:$4 sm:$0xff]   ;;  %v3678_v23 = vld [vmem:[#allocation5 + $0x288] ss:$16 sps:$4 sm:$0xff]  }
  0x76   :  { %v3683_v24 = vld [vmem:[#allocation5 + $0x2a4] ss:$16 sps:$4 sm:$0xff]   ;;  %v3686_v25 = vld [vmem:[#allocation5 + $0x2ac] ss:$16 sps:$4 sm:$0xff]   ;;  %v3681_v26 = vld [vmem:[#allocation5 + $0x2a0] ss:$16 sps:$4 sm:$0xff]  }
  0x77   :  { %911 = vmatpush1.bf16.msra.mxu0 %v3601_v30  ;;  %993 = vmatpush1.bf16.msra.mxu1 %v3602_v31  ;;  %v3684_v27 = vld [vmem:[#allocation5 + $0x2a8] ss:$16 sps:$4 sm:$0xff]   ;;  %v3689_v28 = vld [vmem:[#allocation5 + $0x2c4] ss:$16 sps:$4 sm:$0xff]   ;;  %v3692_v29 = vld [vmem:[#allocation5 + $0x2cc] ss:$16 sps:$4 sm:$0xff]  }
  0x78   :  { %912 = vmatprep.subr.bf16.mxu0 %v3603_v32  ;;  %994 = vmatprep.subr.bf16.mxu1 %v3605_v33  ;;  %v101_v30 = vld [vmem:[#allocation2 + $0x18] sm:$0xff]  ;;  %v3687_v31 = vld [vmem:[#allocation5 + $0x2c0] ss:$16 sps:$4 sm:$0xff]   ;;  %v3713_v46 = vld [vmem:[#allocation5 + $0x344] ss:$16 sps:$4 sm:$0xff]   ;;  %vm3101_vm1 = vcmask 64512  }
  0x79   :  { %v3690_v32 = vld [vmem:[#allocation5 + $0x2c8] ss:$16 sps:$4 sm:$0xff]   ;;  %v105_v33 = vpack.c.bf16 %v101_v30, %v101_v30  ;;  %v3711_v48 = vld [vmem:[#allocation5 + $0x340] ss:$16 sps:$4 sm:$0xff]   ;;  %v3743_v2 = vld [vmem:[#allocation5 + $0x3e4] ss:$16 sps:$4 sm:$0xff]  }
  0x7a   :  { %v3777_v30 = vld [vmem:[#allocation7 + $0xa0] ss:$16 sps:$4 sm:$0xff]  }
  0x7b   :  { %913 = vmatpush1.bf16.msra.mxu0 %v3607_v34  ;;  %995 = vmatpush1.bf16.msra.mxu1 %v3608_v35  ;;  %v3695_v34 = vld [vmem:[#allocation5 + $0x2e4] ss:$16 sps:$4 sm:$0xff]   ;;  %v3698_v35 = vld [vmem:[#allocation5 + $0x2ec] ss:$16 sps:$4 sm:$0xff]  }
  0x7c   :  { %914 = vmatprep.subr.bf16.mxu0 %v3609_v36  ;;  %996 = vmatprep.subr.bf16.mxu1 %v3611_v37  ;;  %v3693_v36 = vld [vmem:[#allocation5 + $0x2e0] ss:$16 sps:$4 sm:$0xff]   ;;  %v3696_v37 = vld [vmem:[#allocation5 + $0x2e8] ss:$16 sps:$4 sm:$0xff]  }
  0x7f   :  { %915 = vmatpush1.bf16.msra.mxu0 %v3613_v38  ;;  %997 = vmatpush1.bf16.msra.mxu1 %v3614_v39  ;;  %v3701_v38 = vld [vmem:[#allocation5 + $0x304] ss:$16 sps:$4 sm:$0xff]   ;;  %v3704_v39 = vld [vmem:[#allocation5 + $0x30c] ss:$16 sps:$4 sm:$0xff]  }
  0x80   :  { %916 = vmatprep.subr.bf16.mxu0 %v3615_v40  ;;  %998 = vmatprep.subr.bf16.mxu1 %v3617_v41  ;;  %v3699_v40 = vld [vmem:[#allocation5 + $0x300] ss:$16 sps:$4 sm:$0xff]   ;;  %v3702_v41 = vld [vmem:[#allocation5 + $0x308] ss:$16 sps:$4 sm:$0xff]  }
  0x83   :  { %917 = vmatpush1.bf16.msra.mxu0 %v3619_v42  ;;  %999 = vmatpush1.bf16.msra.mxu1 %v3620_v43  ;;  %v3707_v42 = vld [vmem:[#allocation5 + $0x324] ss:$16 sps:$4 sm:$0xff]   ;;  %v3710_v43 = vld [vmem:[#allocation5 + $0x32c] ss:$16 sps:$4 sm:$0xff]  }
  0x84   :  { %918 = vmatprep.subr.bf16.mxu0 %v3621_v44  ;;  %1000 = vmatprep.subr.bf16.mxu1 %v3623_v45  ;;  %v3705_v44 = vld [vmem:[#allocation5 + $0x320] ss:$16 sps:$4 sm:$0xff]   ;;  %v3708_v45 = vld [vmem:[#allocation5 + $0x328] ss:$16 sps:$4 sm:$0xff]  }
  0x87   :  { %919 = vmatpush1.bf16.msra.mxu0 %v3625_v47  ;;  %1001 = vmatpush1.bf16.msra.mxu1 %v3626_v49  ;;  %v3716_v47 = vld [vmem:[#allocation5 + $0x34c] ss:$16 sps:$4 sm:$0xff]   ;;  %v3714_v49 = vld [vmem:[#allocation5 + $0x348] ss:$16 sps:$4 sm:$0xff]  }
  0x88   :  { %920 = vmatprep.subr.bf16.mxu0 %v3627_v50  ;;  %1002 = vmatprep.subr.bf16.mxu1 %v3629_v51  ;;  %v3719_v50 = vld [vmem:[#allocation5 + $0x364] ss:$16 sps:$4 sm:$0xff]   ;;  %v3722_v51 = vld [vmem:[#allocation5 + $0x36c] ss:$16 sps:$4 sm:$0xff]  }
  0x8b   :  { %921 = vmatpush1.bf16.msra.mxu0 %v3631_v52  ;;  %1003 = vmatpush1.bf16.msra.mxu1 %v3632_v53  ;;  %v3717_v52 = vld [vmem:[#allocation5 + $0x360] ss:$16 sps:$4 sm:$0xff]   ;;  %v3720_v53 = vld [vmem:[#allocation5 + $0x368] ss:$16 sps:$4 sm:$0xff]  }
  0x8c   :  { %922 = vmatprep.subr.bf16.mxu0 %v3633_v54  ;;  %1004 = vmatprep.subr.bf16.mxu1 %v3635_v55  ;;  %v3725_v54 = vld [vmem:[#allocation5 + $0x384] ss:$16 sps:$4 sm:$0xff]   ;;  %v3728_v55 = vld [vmem:[#allocation5 + $0x38c] ss:$16 sps:$4 sm:$0xff]  }
  0x8f   :  { %923 = vmatpush1.bf16.msra.mxu0 %v3637_v56  ;;  %1005 = vmatpush1.bf16.msra.mxu1 %v3638_v57  ;;  %v3723_v56 = vld [vmem:[#allocation5 + $0x380] ss:$16 sps:$4 sm:$0xff]   ;;  %v3726_v57 = vld [vmem:[#allocation5 + $0x388] ss:$16 sps:$4 sm:$0xff]  }
  0x90   :  { %924 = vmatprep.subr.bf16.mxu0 %v3639_v58  ;;  %1006 = vmatprep.subr.bf16.mxu1 %v3641_v59  ;;  %v3731_v58 = vld [vmem:[#allocation5 + $0x3a4] ss:$16 sps:$4 sm:$0xff]   ;;  %v3734_v59 = vld [vmem:[#allocation5 + $0x3ac] ss:$16 sps:$4 sm:$0xff]  }
  0x93   :  { %925 = vmatpush1.bf16.msra.mxu0 %v3643_v60  ;;  %1007 = vmatpush1.bf16.msra.mxu1 %v3644_v61  ;;  %v3729_v60 = vld [vmem:[#allocation5 + $0x3a0] ss:$16 sps:$4 sm:$0xff]   ;;  %v3732_v61 = vld [vmem:[#allocation5 + $0x3a8] ss:$16 sps:$4 sm:$0xff]  }
  0x94   :  { %926 = vmatprep.subr.bf16.mxu0 %v3645_v62  ;;  %1008 = vmatprep.subr.bf16.mxu1 %v3647_v63  ;;  %v3737_v62 = vld [vmem:[#allocation5 + $0x3c4] ss:$16 sps:$4 sm:$0xff]   ;;  %v3740_v63 = vld [vmem:[#allocation5 + $0x3cc] ss:$16 sps:$4 sm:$0xff]  }
  0x97   :  { %927 = vmatpush1.bf16.msra.mxu0 %v3649_v0  ;;  %1009 = vmatpush1.bf16.msra.mxu1 %v3650_v1  ;;  %v3735_v0 = vld [vmem:[#allocation5 + $0x3c0] ss:$16 sps:$4 sm:$0xff]   ;;  %v3738_v1 = vld [vmem:[#allocation5 + $0x3c8] ss:$16 sps:$4 sm:$0xff]  }
  0x98   :  { %937 = vmatprep.subr.bf16.mxu0 %v3653_v3  ;;  %1019 = vmatprep.subr.bf16.mxu1 %v3656_v4  ;;  %v3746_v3 = vld [vmem:[#allocation5 + $0x3ec] ss:$16 sps:$4 sm:$0xff]   ;;  %v3741_v4 = vld [vmem:[#allocation5 + $0x3e0] ss:$16 sps:$4 sm:$0xff]  }
  0x9a   :  { %929 = vmatmul.mubr.bf16.vlgmr.msra.gmra.mrb[0].mxu0 %v102_v5  ;;  %1011 = vmatmul.mubr.bf16.vlgmr.msra.gmra.mrb[0].mxu1 %v102_v5  ;;  %v3744_v5 = vld [vmem:[#allocation5 + $0x3e8] ss:$16 sps:$4 sm:$0xff]  }
  0x9b   :  { %938 = vmatpush1.bf16.msra.mxu0 %v3651_v6  ;;  %1020 = vmatpush1.bf16.msra.mxu1 %v3654_v7  ;;  %v100_v6 = vld [vmem:[#allocation2 + $0x10] sm:$0xff] }
  0x9c   :  { %939 = vmatprep.subr.bf16.mxu0 %v3659_v8  ;;  %1021 = vmatprep.subr.bf16.mxu1 %v3662_v9  ;;  %v3749_v7 = vld [vmem:[#allocation7 + $0x4] ss:$16 sps:$4 sm:$0xff]   ;;  %v3752_v8 = vld [vmem:[#allocation7 + $0xc] ss:$16 sps:$4 sm:$0xff]   ;;  %v3747_v9 = vld [vmem:[#allocation7] ss:$16 sps:$4 sm:$0xff]  }
  0x9d   :  { %969 = vmatprep.mubr.bf16.mxu0 %v105_v33  ;;  %1051 = vmatprep.mubr.bf16.mxu1 %v105_v33  ;;  %v3788_v33 = vld [vmem:[#allocation7 + $0xcc] ss:$16 sps:$4 sm:$0xff]  }
  0x9f   :  { %940 = vmatpush1.bf16.msra.mxu0 %v3657_v10  ;;  %1022 = vmatpush1.bf16.msra.mxu1 %v3660_v11  ;;  %v3750_v10 = vld [vmem:[#allocation7 + $0x8] ss:$16 sps:$4 sm:$0xff]   ;;  %v104_v11 = vpack.c.bf16 %v100_v6, %v100_v6  ;;  %v3837_v6 = vld [vmem:[#allocation7 + $0x1e0] ss:$16 sps:$4 sm:$0xff]  }
  0xa0   :  { %941 = vmatprep.subr.bf16.mxu0 %v3665_v12  ;;  %1023 = vmatprep.subr.bf16.mxu1 %v3668_v13  ;;  %v3755_v12 = vld [vmem:[#allocation7 + $0x24] ss:$16 sps:$4 sm:$0xff]   ;;  %v3758_v13 = vld [vmem:[#allocation7 + $0x2c] ss:$16 sps:$4 sm:$0xff]  }
  0xa3   :  { %942 = vmatpush1.bf16.msra.mxu0 %v3663_v14  ;;  %1024 = vmatpush1.bf16.msra.mxu1 %v3666_v15  ;;  %v3753_v14 = vld [vmem:[#allocation7 + $0x20] ss:$16 sps:$4 sm:$0xff]   ;;  %v3756_v15 = vld [vmem:[#allocation7 + $0x28] ss:$16 sps:$4 sm:$0xff]  }
  0xa4   :  { %943 = vmatprep.subr.bf16.mxu0 %v3671_v16  ;;  %1025 = vmatprep.subr.bf16.mxu1 %v3674_v17  ;;  %v3761_v16 = vld [vmem:[#allocation7 + $0x44] ss:$16 sps:$4 sm:$0xff]   ;;  %v3764_v17 = vld [vmem:[#allocation7 + $0x4c] ss:$16 sps:$4 sm:$0xff]  }
  0xa7   :  { %944 = vmatpush1.bf16.msra.mxu0 %v3669_v18  ;;  %1026 = vmatpush1.bf16.msra.mxu1 %v3672_v19  ;;  %v3759_v18 = vld [vmem:[#allocation7 + $0x40] ss:$16 sps:$4 sm:$0xff]   ;;  %v3762_v19 = vld [vmem:[#allocation7 + $0x48] ss:$16 sps:$4 sm:$0xff]  }
  0xa8   :  { %945 = vmatprep.subr.bf16.mxu0 %v3677_v20  ;;  %1027 = vmatprep.subr.bf16.mxu1 %v3680_v21  ;;  %v3767_v20 = vld [vmem:[#allocation7 + $0x64] ss:$16 sps:$4 sm:$0xff]   ;;  %v3770_v21 = vld [vmem:[#allocation7 + $0x6c] ss:$16 sps:$4 sm:$0xff]  }
  0xab   :  { %946 = vmatpush1.bf16.msra.mxu0 %v3675_v22  ;;  %1028 = vmatpush1.bf16.msra.mxu1 %v3678_v23  ;;  %v3765_v22 = vld [vmem:[#allocation7 + $0x60] ss:$16 sps:$4 sm:$0xff]   ;;  %v3768_v23 = vld [vmem:[#allocation7 + $0x68] ss:$16 sps:$4 sm:$0xff]  }
  0xac   :  { %947 = vmatprep.subr.bf16.mxu0 %v3683_v24  ;;  %1029 = vmatprep.subr.bf16.mxu1 %v3686_v25  ;;  %v3773_v24 = vld [vmem:[#allocation7 + $0x84] ss:$16 sps:$4 sm:$0xff]   ;;  %v3776_v25 = vld [vmem:[#allocation7 + $0x8c] ss:$16 sps:$4 sm:$0xff]  }
  0xaf   :  { %948 = vmatpush1.bf16.msra.mxu0 %v3681_v26  ;;  %1030 = vmatpush1.bf16.msra.mxu1 %v3684_v27  ;;  %v3771_v26 = vld [vmem:[#allocation7 + $0x80] ss:$16 sps:$4 sm:$0xff]   ;;  %v3774_v27 = vld [vmem:[#allocation7 + $0x88] ss:$16 sps:$4 sm:$0xff]  }
  0xb0   :  { %949 = vmatprep.subr.bf16.mxu0 %v3689_v28  ;;  %1031 = vmatprep.subr.bf16.mxu1 %v3692_v29  ;;  %v3779_v28 = vld [vmem:[#allocation7 + $0xa4] ss:$16 sps:$4 sm:$0xff]   ;;  %v3782_v29 = vld [vmem:[#allocation7 + $0xac] ss:$16 sps:$4 sm:$0xff]  }
  0xb3   :  { %950 = vmatpush1.bf16.msra.mxu0 %v3687_v31  ;;  %1032 = vmatpush1.bf16.msra.mxu1 %v3690_v32  ;;  %v3780_v31 = vld [vmem:[#allocation7 + $0xa8] ss:$16 sps:$4 sm:$0xff]   ;;  %v3785_v32 = vld [vmem:[#allocation7 + $0xc4] ss:$16 sps:$4 sm:$0xff]  }
  0xb4   :  { %951 = vmatprep.subr.bf16.mxu0 %v3695_v34  ;;  %1033 = vmatprep.subr.bf16.mxu1 %v3698_v35  ;;  %v3783_v34 = vld [vmem:[#allocation7 + $0xc0] ss:$16 sps:$4 sm:$0xff]   ;;  %v3786_v35 = vld [vmem:[#allocation7 + $0xc8] ss:$16 sps:$4 sm:$0xff]  }
  0xb7   :  { %952 = vmatpush1.bf16.msra.mxu0 %v3693_v36  ;;  %1034 = vmatpush1.bf16.msra.mxu1 %v3696_v37  ;;  %v3791_v36 = vld [vmem:[#allocation7 + $0xe4] ss:$16 sps:$4 sm:$0xff]   ;;  %v3794_v37 = vld [vmem:[#allocation7 + $0xec] ss:$16 sps:$4 sm:$0xff]  }
  0xb8   :  { %953 = vmatprep.subr.bf16.mxu0 %v3701_v38  ;;  %1035 = vmatprep.subr.bf16.mxu1 %v3704_v39  ;;  %v3789_v38 = vld [vmem:[#allocation7 + $0xe0] ss:$16 sps:$4 sm:$0xff]   ;;  %v3792_v39 = vld [vmem:[#allocation7 + $0xe8] ss:$16 sps:$4 sm:$0xff]  }
  0xbb   :  { %954 = vmatpush1.bf16.msra.mxu0 %v3699_v40  ;;  %1036 = vmatpush1.bf16.msra.mxu1 %v3702_v41  ;;  %v3797_v40 = vld [vmem:[#allocation7 + $0x104] ss:$16 sps:$4 sm:$0xff]   ;;  %v3800_v41 = vld [vmem:[#allocation7 + $0x10c] ss:$16 sps:$4 sm:$0xff]  }
  0xbc   :  { %955 = vmatprep.subr.bf16.mxu0 %v3707_v42  ;;  %1037 = vmatprep.subr.bf16.mxu1 %v3710_v43  ;;  %v3795_v42 = vld [vmem:[#allocation7 + $0x100] ss:$16 sps:$4 sm:$0xff]   ;;  %v3798_v43 = vld [vmem:[#allocation7 + $0x108] ss:$16 sps:$4 sm:$0xff]  }
  0xbf   :  { %956 = vmatpush1.bf16.msra.mxu0 %v3705_v44  ;;  %1038 = vmatpush1.bf16.msra.mxu1 %v3708_v45  ;;  %v3803_v44 = vld [vmem:[#allocation7 + $0x124] ss:$16 sps:$4 sm:$0xff]   ;;  %v3806_v45 = vld [vmem:[#allocation7 + $0x12c] ss:$16 sps:$4 sm:$0xff]  }
  0xc0   :  { %957 = vmatprep.subr.bf16.mxu0 %v3713_v46  ;;  %1039 = vmatprep.subr.bf16.mxu1 %v3716_v47  ;;  %v3801_v46 = vld [vmem:[#allocation7 + $0x120] ss:$16 sps:$4 sm:$0xff]   ;;  %v3804_v47 = vld [vmem:[#allocation7 + $0x128] ss:$16 sps:$4 sm:$0xff]  }
  0xc3   :  { %958 = vmatpush1.bf16.msra.mxu0 %v3711_v48  ;;  %1040 = vmatpush1.bf16.msra.mxu1 %v3714_v49  ;;  %v3809_v48 = vld [vmem:[#allocation7 + $0x144] ss:$16 sps:$4 sm:$0xff]   ;;  %v3812_v49 = vld [vmem:[#allocation7 + $0x14c] ss:$16 sps:$4 sm:$0xff]  }
  0xc4   :  { %959 = vmatprep.subr.bf16.mxu0 %v3719_v50  ;;  %1041 = vmatprep.subr.bf16.mxu1 %v3722_v51  ;;  %v3807_v50 = vld [vmem:[#allocation7 + $0x140] ss:$16 sps:$4 sm:$0xff]   ;;  %v3810_v51 = vld [vmem:[#allocation7 + $0x148] ss:$16 sps:$4 sm:$0xff]  }
  0xc7   :  { %960 = vmatpush1.bf16.msra.mxu0 %v3717_v52  ;;  %1042 = vmatpush1.bf16.msra.mxu1 %v3720_v53  ;;  %v3815_v52 = vld [vmem:[#allocation7 + $0x164] ss:$16 sps:$4 sm:$0xff]   ;;  %v3818_v53 = vld [vmem:[#allocation7 + $0x16c] ss:$16 sps:$4 sm:$0xff]  }
  0xc8   :  { %961 = vmatprep.subr.bf16.mxu0 %v3725_v54  ;;  %1043 = vmatprep.subr.bf16.mxu1 %v3728_v55  ;;  %v3813_v54 = vld [vmem:[#allocation7 + $0x160] ss:$16 sps:$4 sm:$0xff]   ;;  %v3816_v55 = vld [vmem:[#allocation7 + $0x168] ss:$16 sps:$4 sm:$0xff]  }
  0xcb   :  { %962 = vmatpush1.bf16.msra.mxu0 %v3723_v56  ;;  %1044 = vmatpush1.bf16.msra.mxu1 %v3726_v57  ;;  %v3821_v56 = vld [vmem:[#allocation7 + $0x184] ss:$16 sps:$4 sm:$0xff]   ;;  %v3824_v57 = vld [vmem:[#allocation7 + $0x18c] ss:$16 sps:$4 sm:$0xff]  }
  0xcc   :  { %963 = vmatprep.subr.bf16.mxu0 %v3731_v58  ;;  %1045 = vmatprep.subr.bf16.mxu1 %v3734_v59  ;;  %v3819_v58 = vld [vmem:[#allocation7 + $0x180] ss:$16 sps:$4 sm:$0xff]   ;;  %v3822_v59 = vld [vmem:[#allocation7 + $0x188] ss:$16 sps:$4 sm:$0xff]  }
  0xcf   :  { %964 = vmatpush1.bf16.msra.mxu0 %v3729_v60  ;;  %1046 = vmatpush1.bf16.msra.mxu1 %v3732_v61  ;;  %v3827_v60 = vld [vmem:[#allocation7 + $0x1a4] ss:$16 sps:$4 sm:$0xff]   ;;  %v3830_v61 = vld [vmem:[#allocation7 + $0x1ac] ss:$16 sps:$4 sm:$0xff]  }
  0xd0   :  { %965 = vmatprep.subr.bf16.mxu0 %v3737_v62  ;;  %1047 = vmatprep.subr.bf16.mxu1 %v3740_v63  ;;  %v3825_v62 = vld [vmem:[#allocation7 + $0x1a0] ss:$16 sps:$4 sm:$0xff]   ;;  %v3828_v63 = vld [vmem:[#allocation7 + $0x1a8] ss:$16 sps:$4 sm:$0xff]  }
  0xd3   :  { %966 = vmatpush1.bf16.msra.mxu0 %v3735_v0  ;;  %1048 = vmatpush1.bf16.msra.mxu1 %v3738_v1  ;;  %v3833_v0 = vld [vmem:[#allocation7 + $0x1c4] ss:$16 sps:$4 sm:$0xff]   ;;  %v3836_v1 = vld [vmem:[#allocation7 + $0x1cc] ss:$16 sps:$4 sm:$0xff]  }
  0xd4   :  { %967 = vmatprep.subr.bf16.mxu0 %v3743_v2  ;;  %1049 = vmatprep.subr.bf16.mxu1 %v3746_v3  ;;  %v3831_v2 = vld [vmem:[#allocation7 + $0x1c0] ss:$16 sps:$4 sm:$0xff]   ;;  %v3834_v3 = vld [vmem:[#allocation7 + $0x1c8] ss:$16 sps:$4 sm:$0xff]  }
  0xd7   :  { %968 = vmatpush1.bf16.msra.mxu0 %v3741_v4  ;;  %1050 = vmatpush1.bf16.msra.mxu1 %v3744_v5  ;;  %v3839_v4 = vld [vmem:[#allocation7 + $0x1e4] ss:$16 sps:$4 sm:$0xff]   ;;  %v3842_v5 = vld [vmem:[#allocation7 + $0x1ec] ss:$16 sps:$4 sm:$0xff]  }
  0xd8   :  { %1858 = vmatprep.subr.bf16.mxu0 %v3749_v7  ;;  %1940 = vmatprep.subr.bf16.mxu1 %v3752_v8  ;;  %v3840_v7 = vld [vmem:[#allocation7 + $0x1e8] ss:$16 sps:$4 sm:$0xff]   ;;  %v3845_v8 = vld [vmem:[#allocation7 + $0x204] ss:$16 sps:$4 sm:$0xff]  }
  0xda   :  { %970 = vmatmul.mubr.bf16.vlgmr.msra.gmra.mrb[0].mxu0 %v104_v11  ;;  %1052 = vmatmul.mubr.bf16.vlgmr.msra.gmra.mrb[0].mxu1 %v104_v11 }
  0xdb   :  { %1859 = vmatpush1.bf16.msra.mxu0 %v3747_v9  ;;  %1941 = vmatpush1.bf16.msra.mxu1 %v3750_v10  ;;  %v3848_v9 = vld [vmem:[#allocation7 + $0x20c] ss:$16 sps:$4 sm:$0xff]   ;;  %v236_v10 = vlaneseq }
  0xdc   :  { %1860 = vmatprep.subr.bf16.mxu0 %v3755_v12  ;;  %1942 = vmatprep.subr.bf16.mxu1 %v3758_v13  ;;  %v4413_v13 = vld [vmem:[%s4479_s2] sm:$0xf] }
  0xdd   :  { %v4405_v11 = vshrl.u32 %v236_v10, 7 }
  0xdf   :  { %1861 = vmatpush1.bf16.msra.mxu0 %v3753_v14  ;;  %1943 = vmatpush1.bf16.msra.mxu1 %v3756_v15  ;;  %v4408_v12 = vsub.s32 0, %v4405_v11  ;;  %v4416_v14 = vsub.s32 1, %v4405_v11  ;;  %v4419_v15 = vsub.s32 3, %v4405_v11 }
  0xe0   :  { %1862 = vmatprep.subr.bf16.mxu0 %v3761_v16  ;;  %1944 = vmatprep.subr.bf16.mxu1 %v3764_v17 }
  0xe1   :  { %v239_v16 = vrot.slane %v4413_v13, %v4408_v12  ;;  %v243_v17 = vrot.slane %v4413_v13, %v4416_v14 }
  0xe3   :  { %1863 = vmatpush1.bf16.msra.mxu0 %v3759_v18  ;;  %1945 = vmatpush1.bf16.msra.mxu1 %v3762_v19  ;;  %v251_v18 = vrot.slane %v4413_v13, %v4419_v15 }
  0xe4   :  { %1864 = vmatprep.subr.bf16.mxu0 %v3767_v20  ;;  %1946 = vmatprep.subr.bf16.mxu1 %v3770_v21 }
  0xe7   :  { %1865 = vmatpush1.bf16.msra.mxu0 %v3765_v22  ;;  %1947 = vmatpush1.bf16.msra.mxu1 %v3768_v23 }
  0xe8   :  { %1866 = vmatprep.subr.bf16.mxu0 %v3773_v24  ;;  %1948 = vmatprep.subr.bf16.mxu1 %v3776_v25 }
  0xeb   :  { %1867 = vmatpush1.bf16.msra.mxu0 %v3771_v26  ;;  %1949 = vmatpush1.bf16.msra.mxu1 %v3774_v27 }
  0xec   :  { %1868 = vmatprep.subr.bf16.mxu0 %v3779_v28  ;;  %1950 = vmatprep.subr.bf16.mxu1 %v3782_v29 }
  0xef   :  { %1869 = vmatpush1.bf16.msra.mxu0 %v3777_v30  ;;  %1951 = vmatpush1.bf16.msra.mxu1 %v3780_v31 }
  0xf0   :  { %1870 = vmatprep.subr.bf16.mxu0 %v3785_v32  ;;  %1952 = vmatprep.subr.bf16.mxu1 %v3788_v33 }
  0xf3   :  { %1871 = vmatpush1.bf16.msra.mxu0 %v3783_v34  ;;  %1953 = vmatpush1.bf16.msra.mxu1 %v3786_v35  ;;  %v3843_v34 = vld [vmem:[#allocation7 + $0x200] ss:$16 sps:$4 sm:$0xff]   ;;  %v3846_v35 = vld [vmem:[#allocation7 + $0x208] ss:$16 sps:$4 sm:$0xff]  }
  0xf4   :  { %1872 = vmatprep.subr.bf16.mxu0 %v3791_v36  ;;  %1954 = vmatprep.subr.bf16.mxu1 %v3794_v37  ;;  %v3851_v37 = vld [vmem:[#allocation7 + $0x224] ss:$16 sps:$4 sm:$0xff]  }
  0xf7   :  { %1873 = vmatpush1.bf16.msra.mxu0 %v3789_v38  ;;  %1955 = vmatpush1.bf16.msra.mxu1 %v3792_v39  ;;  %v3854_v38 = vld [vmem:[#allocation7 + $0x22c] ss:$16 sps:$4 sm:$0xff]  }
  0xf8   :  { %1874 = vmatprep.subr.bf16.mxu0 %v3797_v40  ;;  %1956 = vmatprep.subr.bf16.mxu1 %v3800_v41  ;;  %v3849_v40 = vld [vmem:[#allocation7 + $0x220] ss:$16 sps:$4 sm:$0xff]   ;;  %v3852_v41 = vld [vmem:[#allocation7 + $0x228] ss:$16 sps:$4 sm:$0xff]  }
  0xfb   :  { %1875 = vmatpush1.bf16.msra.mxu0 %v3795_v42  ;;  %1957 = vmatpush1.bf16.msra.mxu1 %v3798_v43  ;;  %v3857_v42 = vld [vmem:[#allocation7 + $0x244] ss:$16 sps:$4 sm:$0xff]   ;;  %v3860_v43 = vld [vmem:[#allocation7 + $0x24c] ss:$16 sps:$4 sm:$0xff]  }
  0xfc   :  { %1876 = vmatprep.subr.bf16.mxu0 %v3803_v44  ;;  %1958 = vmatprep.subr.bf16.mxu1 %v3806_v45  ;;  %v3855_v44 = vld [vmem:[#allocation7 + $0x240] ss:$16 sps:$4 sm:$0xff]   ;;  %v3858_v45 = vld [vmem:[#allocation7 + $0x248] ss:$16 sps:$4 sm:$0xff]  }
  0xff   :  { %1877 = vmatpush1.bf16.msra.mxu0 %v3801_v46  ;;  %1959 = vmatpush1.bf16.msra.mxu1 %v3804_v47  ;;  %v3863_v46 = vld [vmem:[#allocation7 + $0x264] ss:$16 sps:$4 sm:$0xff]   ;;  %v3866_v47 = vld [vmem:[#allocation7 + $0x26c] ss:$16 sps:$4 sm:$0xff]  }
 0x100   :  { %1878 = vmatprep.subr.bf16.mxu0 %v3809_v48  ;;  %1960 = vmatprep.subr.bf16.mxu1 %v3812_v49  ;;  %v3861_v48 = vld [vmem:[#allocation7 + $0x260] ss:$16 sps:$4 sm:$0xff]   ;;  %v3864_v49 = vld [vmem:[#allocation7 + $0x268] ss:$16 sps:$4 sm:$0xff]  }
 0x103   :  { %1879 = vmatpush1.bf16.msra.mxu0 %v3807_v50  ;;  %1961 = vmatpush1.bf16.msra.mxu1 %v3810_v51  ;;  %v3869_v50 = vld [vmem:[#allocation7 + $0x284] ss:$16 sps:$4 sm:$0xff]   ;;  %v3872_v51 = vld [vmem:[#allocation7 + $0x28c] ss:$16 sps:$4 sm:$0xff]  }
 0x104   :  { %1880 = vmatprep.subr.bf16.mxu0 %v3815_v52  ;;  %1962 = vmatprep.subr.bf16.mxu1 %v3818_v53  ;;  %v3867_v52 = vld [vmem:[#allocation7 + $0x280] ss:$16 sps:$4 sm:$0xff]   ;;  %v3870_v53 = vld [vmem:[#allocation7 + $0x288] ss:$16 sps:$4 sm:$0xff]  }
 0x107   :  { %1881 = vmatpush1.bf16.msra.mxu0 %v3813_v54  ;;  %1963 = vmatpush1.bf16.msra.mxu1 %v3816_v55  ;;  %v3875_v54 = vld [vmem:[#allocation7 + $0x2a4] ss:$16 sps:$4 sm:$0xff]   ;;  %v3878_v55 = vld [vmem:[#allocation7 + $0x2ac] ss:$16 sps:$4 sm:$0xff]  }
 0x108   :  { %1882 = vmatprep.subr.bf16.mxu0 %v3821_v56  ;;  %1964 = vmatprep.subr.bf16.mxu1 %v3824_v57  ;;  %v3873_v56 = vld [vmem:[#allocation7 + $0x2a0] ss:$16 sps:$4 sm:$0xff]   ;;  %v3876_v57 = vld [vmem:[#allocation7 + $0x2a8] ss:$16 sps:$4 sm:$0xff]  }
 0x10b   :  { %1883 = vmatpush1.bf16.msra.mxu0 %v3819_v58  ;;  %1965 = vmatpush1.bf16.msra.mxu1 %v3822_v59  ;;  %v3881_v58 = vld [vmem:[#allocation7 + $0x2c4] ss:$16 sps:$4 sm:$0xff]   ;;  %v3884_v59 = vld [vmem:[#allocation7 + $0x2cc] ss:$16 sps:$4 sm:$0xff]  }
 0x10c   :  { %1884 = vmatprep.subr.bf16.mxu0 %v3827_v60  ;;  %1966 = vmatprep.subr.bf16.mxu1 %v3830_v61  ;;  %v3879_v60 = vld [vmem:[#allocation7 + $0x2c0] ss:$16 sps:$4 sm:$0xff]   ;;  %v3882_v61 = vld [vmem:[#allocation7 + $0x2c8] ss:$16 sps:$4 sm:$0xff]  }
 0x10f   :  { %1885 = vmatpush1.bf16.msra.mxu0 %v3825_v62  ;;  %1967 = vmatpush1.bf16.msra.mxu1 %v3828_v63  ;;  %v3887_v62 = vld [vmem:[#allocation7 + $0x2e4] ss:$16 sps:$4 sm:$0xff]   ;;  %v3890_v63 = vld [vmem:[#allocation7 + $0x2ec] ss:$16 sps:$4 sm:$0xff]  }
 0x110   :  { %1886 = vmatprep.subr.bf16.mxu0 %v3833_v0  ;;  %1968 = vmatprep.subr.bf16.mxu1 %v3836_v1  ;;  %v3885_v0 = vld [vmem:[#allocation7 + $0x2e0] ss:$16 sps:$4 sm:$0xff]   ;;  %v3888_v1 = vld [vmem:[#allocation7 + $0x2e8] ss:$16 sps:$4 sm:$0xff]  }
 0x113   :  { %1887 = vmatpush1.bf16.msra.mxu0 %v3831_v2  ;;  %1969 = vmatpush1.bf16.msra.mxu1 %v3834_v3  ;;  %v3893_v2 = vld [vmem:[#allocation7 + $0x304] ss:$16 sps:$4 sm:$0xff]   ;;  %v3896_v3 = vld [vmem:[#allocation7 + $0x30c] ss:$16 sps:$4 sm:$0xff]  }
 0x114   :  { %1888 = vmatprep.subr.bf16.mxu0 %v3839_v4  ;;  %1970 = vmatprep.subr.bf16.mxu1 %v3842_v5  ;;  %v3891_v4 = vld [vmem:[#allocation7 + $0x300] ss:$16 sps:$4 sm:$0xff]   ;;  %v3894_v5 = vld [vmem:[#allocation7 + $0x308] ss:$16 sps:$4 sm:$0xff]  }
 0x117   :  { %1889 = vmatpush1.bf16.msra.mxu0 %v3837_v6  ;;  %1971 = vmatpush1.bf16.msra.mxu1 %v3840_v7  ;;  %v3899_v6 = vld [vmem:[#allocation7 + $0x324] ss:$16 sps:$4 sm:$0xff]   ;;  %v3902_v7 = vld [vmem:[#allocation7 + $0x32c] ss:$16 sps:$4 sm:$0xff]  }
 0x118   :  { %1899 = vmatprep.subr.bf16.mxu0 %v3845_v8  ;;  %1981 = vmatprep.subr.bf16.mxu1 %v3848_v9  ;;  %v3897_v8 = vld [vmem:[#allocation7 + $0x320] ss:$16 sps:$4 sm:$0xff]   ;;  %v3900_v9 = vld [vmem:[#allocation7 + $0x328] ss:$16 sps:$4 sm:$0xff]  }
 0x1ad   :  { %v971_v19 = vpop.f32.mrb[0].mxu0  ;;  %v4427_v20 = vpop.f32.mrb[0].mxu1 }
 0x1ae   :  { %v3509_v21 = vadd.f32 %v971_v19, %v239_v16  ;;  %v973_v22 = vpop.f32.mrb[1].mxu0  ;;  %v1055_v23 = vpop.f32.mrb[1].mxu1  ;;  %v3905_v16 = vld [vmem:[#allocation7 + $0x344] ss:$16 sps:$4 sm:$0xff]   ;;  %v3906_v19 = vld [vmem:[#allocation7 + $0x348] ss:$16 sps:$4 sm:$0xff]  }
 0x1af   :  { %v3510_v24 = vadd.f32 %v973_v22, %v243_v17  ;;  %v3512_v25 = vadd.f32 %v1055_v23, %v251_v18  ;;  %v975_v26 = vpop.f32.mrb[2].mxu0  ;;  %v1057_v27 = vpop.f32.mrb[2].mxu1  ;;  %v3908_v17 = vld [vmem:[#allocation7 + $0x34c] ss:$16 sps:$4 sm:$0xff]   ;;  %v3903_v18 = vld [vmem:[#allocation7 + $0x340] ss:$16 sps:$4 sm:$0xff]  }
 0x1b0   :  { %v1060_v28 = vmax.f32 %v3509_v21, 0.0  ;;  %v976_v29 = vpop.f32.mrb[3].mxu0  ;;  %v1058_v30 = vpop.f32.mrb[3].mxu1  ;;  %v3911_v21 = vld [vmem:[#allocation7 + $0x364] ss:$16 sps:$4 sm:$0xff]  }
 0x1b1   :  { %v1061_v31 = vmax.f32 %v3510_v24, 0.0  ;;  %v1063_v32 = vmax.f32 %v3512_v25, 0.0  ;;  %v3914_v22 = vld [vmem:[#allocation7 + $0x36c] ss:$16 sps:$4 sm:$0xff]   ;;  %v3909_v23 = vld [vmem:[#allocation7 + $0x360] ss:$16 sps:$4 sm:$0xff]  }
 0x1b2   :  { %v1064_v36 = vpack.c.bf16 %v1060_v28, %v1060_v28  ;;  %v3912_v24 = vld [vmem:[#allocation7 + $0x368] ss:$16 sps:$4 sm:$0xff]   ;;  %v3917_v25 = vld [vmem:[#allocation7 + $0x384] ss:$16 sps:$4 sm:$0xff]   ;;  %v3920_v26 = vld [vmem:[#allocation7 + $0x38c] ss:$16 sps:$4 sm:$0xff]  }
 0x1b3   :  { %v1065_v33 = vpack.c.bf16 %v1061_v31, %v1061_v31  ;;  %v1067_v39 = vpack.c.bf16 %v1063_v32, %v1063_v32  ;;  %v3915_v27 = vld [vmem:[#allocation7 + $0x380] ss:$16 sps:$4 sm:$0xff]   ;;  %v3918_v28 = vld [vmem:[#allocation7 + $0x388] ss:$16 sps:$4 sm:$0xff]   ;;  %v4430_v29 = vsub.s32 2, %v4405_v11 }
 0x1b4   :  { %v3923_v30 = vld [vmem:[#allocation7 + $0x3a4] ss:$16 sps:$4 sm:$0xff]   ;;  %v3926_v31 = vld [vmem:[#allocation7 + $0x3ac] ss:$16 sps:$4 sm:$0xff]   ;;  %v3921_v32 = vld [vmem:[#allocation7 + $0x3a0] ss:$16 sps:$4 sm:$0xff]  }
 0x1b5   :  { %1890 = vmatprep.mubr.bf16.mxu0 %v1065_v33  ;;  %1972 = vmatprep.mubr.bf16.mxu1 %v1065_v33  ;;  %v3924_v33 = vld [vmem:[#allocation7 + $0x3a8] ss:$16 sps:$4 sm:$0xff]  }
 0x1b6   :  { %1891 = vmatmul.mubr.bf16.vlgmr.msra.gmra.mrb[4].mxu0 %v1064_v36  ;;  %1973 = vmatmul.mubr.bf16.vlgmr.msra.gmra.mrb[4].mxu1 %v1064_v36  ;;  %v3932_v36 = vld [vmem:[#allocation7 + $0x3cc] ss:$16 sps:$4 sm:$0xff]   ;;  %v3930_v11 = vld [vmem:[#allocation7 + $0x3c8] ss:$16 sps:$4 sm:$0xff]  }
 0x1b7   :  { %1900 = vmatpush1.bf16.msra.mxu0 %v3843_v34  ;;  %1982 = vmatpush1.bf16.msra.mxu1 %v3846_v35  ;;  %v247_v34 = vrot.slane %v4413_v13, %v4430_v29  ;;  %v3929_v35 = vld [vmem:[#allocation7 + $0x3c4] ss:$16 sps:$4 sm:$0xff]  }
 0x1b8   :  { %1931 = vmatprep.mubr.bf16.mxu0 %v1067_v39  ;;  %2013 = vmatprep.mubr.bf16.mxu1 %v1067_v39  ;;  %v3935_v39 = vld [vmem:[#allocation7 + $0x3e4] ss:$16 sps:$4 sm:$0xff]  }
 0x1b9   :  { %1901 = vmatprep.subr.bf16.mxu0 %v3851_v37  ;;  %1983 = vmatprep.subr.bf16.mxu1 %v3854_v38  ;;  %v3927_v37 = vld [vmem:[#allocation7 + $0x3c0] ss:$16 sps:$4 sm:$0xff]   ;;  %v3511_v38 = vadd.f32 %v4427_v20, %v247_v34  ;;  %v3941_v13 = vld [vmem:[#allocation8 + $0x4] ss:$16 sps:$4 sm:$0xff]   ;;  %v4008_v34 = vld [vmem:[#allocation8 + $0x168] ss:$16 sps:$4 sm:$0xff]  }
 0x1ba   :  { %v3947_v20 = vld [vmem:[#allocation8 + $0x24] ss:$16 sps:$4 sm:$0xff]  }
 0x1bb   :  { %1902 = vmatpush1.bf16.msra.mxu0 %v3849_v40  ;;  %1984 = vmatpush1.bf16.msra.mxu1 %v3852_v41  ;;  %v3938_v40 = vld [vmem:[#allocation7 + $0x3ec] ss:$16 sps:$4 sm:$0xff]   ;;  %v3933_v41 = vld [vmem:[#allocation7 + $0x3e0] ss:$16 sps:$4 sm:$0xff]  }
 0x1bc   :  { %1903 = vmatprep.subr.bf16.mxu0 %v3857_v42  ;;  %1985 = vmatprep.subr.bf16.mxu1 %v3860_v43  ;;  %v3936_v42 = vld [vmem:[#allocation7 + $0x3e8] ss:$16 sps:$4 sm:$0xff]   ;;  %v1062_v43 = vmax.f32 %v3511_v38, 0.0  ;;  %v4019_v38 = vld [vmem:[#allocation8 + $0x1a4] ss:$16 sps:$4 sm:$0xff]  }
 0x1bf   :  { %1904 = vmatpush1.bf16.msra.mxu0 %v3855_v44  ;;  %1986 = vmatpush1.bf16.msra.mxu1 %v3858_v45  ;;  %v3944_v44 = vld [vmem:[#allocation8 + $0xc] ss:$16 sps:$4 sm:$0xff]   ;;  %v3939_v45 = vld [vmem:[#allocation8] ss:$16 sps:$4 sm:$0xff]  }
 0x1c0   :  { %1905 = vmatprep.subr.bf16.mxu0 %v3863_v46  ;;  %1987 = vmatprep.subr.bf16.mxu1 %v3866_v47  ;;  %v3942_v46 = vld [vmem:[#allocation8 + $0x8] ss:$16 sps:$4 sm:$0xff]   ;;  %v1066_v47 = vpack.c.bf16 %v1062_v43, %v1062_v43  ;;  %v4028_v43 = vld [vmem:[#allocation8 + $0x1cc] ss:$16 sps:$4 sm:$0xff]  }
 0x1c3   :  { %1906 = vmatpush1.bf16.msra.mxu0 %v3861_v48  ;;  %1988 = vmatpush1.bf16.msra.mxu1 %v3864_v49  ;;  %v3950_v48 = vld [vmem:[#allocation8 + $0x2c] ss:$16 sps:$4 sm:$0xff]   ;;  %v3945_v49 = vld [vmem:[#allocation8 + $0x20] ss:$16 sps:$4 sm:$0xff]  }
 0x1c4   :  { %1907 = vmatprep.subr.bf16.mxu0 %v3869_v50  ;;  %1989 = vmatprep.subr.bf16.mxu1 %v3872_v51  ;;  %v3948_v50 = vld [vmem:[#allocation8 + $0x28] ss:$16 sps:$4 sm:$0xff]   ;;  %v3953_v51 = vld [vmem:[#allocation8 + $0x44] ss:$16 sps:$4 sm:$0xff]  }
 0x1c7   :  { %1908 = vmatpush1.bf16.msra.mxu0 %v3867_v52  ;;  %1990 = vmatpush1.bf16.msra.mxu1 %v3870_v53  ;;  %v3956_v52 = vld [vmem:[#allocation8 + $0x4c] ss:$16 sps:$4 sm:$0xff]   ;;  %v3951_v53 = vld [vmem:[#allocation8 + $0x40] ss:$16 sps:$4 sm:$0xff]  }
 0x1c8   :  { %1909 = vmatprep.subr.bf16.mxu0 %v3875_v54  ;;  %1991 = vmatprep.subr.bf16.mxu1 %v3878_v55  ;;  %v3954_v54 = vld [vmem:[#allocation8 + $0x48] ss:$16 sps:$4 sm:$0xff]   ;;  %v3959_v55 = vld [vmem:[#allocation8 + $0x64] ss:$16 sps:$4 sm:$0xff]  }
 0x1cb   :  { %1910 = vmatpush1.bf16.msra.mxu0 %v3873_v56  ;;  %1992 = vmatpush1.bf16.msra.mxu1 %v3876_v57  ;;  %v3962_v56 = vld [vmem:[#allocation8 + $0x6c] ss:$16 sps:$4 sm:$0xff]   ;;  %v3957_v57 = vld [vmem:[#allocation8 + $0x60] ss:$16 sps:$4 sm:$0xff]  }
 0x1cc   :  { %1911 = vmatprep.subr.bf16.mxu0 %v3881_v58  ;;  %1993 = vmatprep.subr.bf16.mxu1 %v3884_v59  ;;  %v3960_v58 = vld [vmem:[#allocation8 + $0x68] ss:$16 sps:$4 sm:$0xff]   ;;  %v3965_v59 = vld [vmem:[#allocation8 + $0x84] ss:$16 sps:$4 sm:$0xff]  }
 0x1cf   :  { %1912 = vmatpush1.bf16.msra.mxu0 %v3879_v60  ;;  %1994 = vmatpush1.bf16.msra.mxu1 %v3882_v61  ;;  %v3968_v60 = vld [vmem:[#allocation8 + $0x8c] ss:$16 sps:$4 sm:$0xff]   ;;  %v3963_v61 = vld [vmem:[#allocation8 + $0x80] ss:$16 sps:$4 sm:$0xff]  }
 0x1d0   :  { %1913 = vmatprep.subr.bf16.mxu0 %v3887_v62  ;;  %1995 = vmatprep.subr.bf16.mxu1 %v3890_v63  ;;  %v3966_v62 = vld [vmem:[#allocation8 + $0x88] ss:$16 sps:$4 sm:$0xff]   ;;  %v3971_v63 = vld [vmem:[#allocation8 + $0xa4] ss:$16 sps:$4 sm:$0xff]  }
 0x1d3   :  { %1914 = vmatpush1.bf16.msra.mxu0 %v3885_v0  ;;  %1996 = vmatpush1.bf16.msra.mxu1 %v3888_v1  ;;  %v3974_v0 = vld [vmem:[#allocation8 + $0xac] ss:$16 sps:$4 sm:$0xff]   ;;  %v3969_v1 = vld [vmem:[#allocation8 + $0xa0] ss:$16 sps:$4 sm:$0xff]  }
 0x1d4   :  { %1915 = vmatprep.subr.bf16.mxu0 %v3893_v2  ;;  %1997 = vmatprep.subr.bf16.mxu1 %v3896_v3  ;;  %v3972_v2 = vld [vmem:[#allocation8 + $0xa8] ss:$16 sps:$4 sm:$0xff]   ;;  %v3977_v3 = vld [vmem:[#allocation8 + $0xc4] ss:$16 sps:$4 sm:$0xff]  }
 0x1d7   :  { %1916 = vmatpush1.bf16.msra.mxu0 %v3891_v4  ;;  %1998 = vmatpush1.bf16.msra.mxu1 %v3894_v5  ;;  %v3980_v4 = vld [vmem:[#allocation8 + $0xcc] ss:$16 sps:$4 sm:$0xff]   ;;  %v3975_v5 = vld [vmem:[#allocation8 + $0xc0] ss:$16 sps:$4 sm:$0xff]  }
 0x1d8   :  { %1917 = vmatprep.subr.bf16.mxu0 %v3899_v6  ;;  %1999 = vmatprep.subr.bf16.mxu1 %v3902_v7  ;;  %v3978_v6 = vld [vmem:[#allocation8 + $0xc8] ss:$16 sps:$4 sm:$0xff]   ;;  %v3983_v7 = vld [vmem:[#allocation8 + $0xe4] ss:$16 sps:$4 sm:$0xff]  }
 0x1db   :  { %1918 = vmatpush1.bf16.msra.mxu0 %v3897_v8  ;;  %2000 = vmatpush1.bf16.msra.mxu1 %v3900_v9  ;;  %v3986_v8 = vld [vmem:[#allocation8 + $0xec] ss:$16 sps:$4 sm:$0xff]   ;;  %v3981_v9 = vld [vmem:[#allocation8 + $0xe0] ss:$16 sps:$4 sm:$0xff]  }
 0x1dc   :  { %1919 = vmatprep.subr.bf16.mxu0 %v3905_v16  ;;  %2001 = vmatprep.subr.bf16.mxu1 %v3908_v17  ;;  %v3984_v16 = vld [vmem:[#allocation8 + $0xe8] ss:$16 sps:$4 sm:$0xff]   ;;  %v3989_v17 = vld [vmem:[#allocation8 + $0x104] ss:$16 sps:$4 sm:$0xff]  }
 0x1df   :  { %1920 = vmatpush1.bf16.msra.mxu0 %v3903_v18  ;;  %2002 = vmatpush1.bf16.msra.mxu1 %v3906_v19  ;;  %v3992_v18 = vld [vmem:[#allocation8 + $0x10c] ss:$16 sps:$4 sm:$0xff]   ;;  %v3987_v19 = vld [vmem:[#allocation8 + $0x100] ss:$16 sps:$4 sm:$0xff]  }
 0x1e0   :  { %1921 = vmatprep.subr.bf16.mxu0 %v3911_v21  ;;  %2003 = vmatprep.subr.bf16.mxu1 %v3914_v22  ;;  %v3990_v21 = vld [vmem:[#allocation8 + $0x108] ss:$16 sps:$4 sm:$0xff]   ;;  %v3995_v22 = vld [vmem:[#allocation8 + $0x124] ss:$16 sps:$4 sm:$0xff]  }
 0x1e3   :  { %1922 = vmatpush1.bf16.msra.mxu0 %v3909_v23  ;;  %2004 = vmatpush1.bf16.msra.mxu1 %v3912_v24  ;;  %v3998_v23 = vld [vmem:[#allocation8 + $0x12c] ss:$16 sps:$4 sm:$0xff]   ;;  %v3993_v24 = vld [vmem:[#allocation8 + $0x120] ss:$16 sps:$4 sm:$0xff]  }
 0x1e4   :  { %1923 = vmatprep.subr.bf16.mxu0 %v3917_v25  ;;  %2005 = vmatprep.subr.bf16.mxu1 %v3920_v26  ;;  %v3996_v25 = vld [vmem:[#allocation8 + $0x128] ss:$16 sps:$4 sm:$0xff]   ;;  %v4001_v26 = vld [vmem:[#allocation8 + $0x144] ss:$16 sps:$4 sm:$0xff]  }
 0x1e7   :  { %1924 = vmatpush1.bf16.msra.mxu0 %v3915_v27  ;;  %2006 = vmatpush1.bf16.msra.mxu1 %v3918_v28  ;;  %v4004_v27 = vld [vmem:[#allocation8 + $0x14c] ss:$16 sps:$4 sm:$0xff]   ;;  %v3999_v28 = vld [vmem:[#allocation8 + $0x140] ss:$16 sps:$4 sm:$0xff]  }
 0x1e8   :  { %1925 = vmatprep.subr.bf16.mxu0 %v3923_v30  ;;  %2007 = vmatprep.subr.bf16.mxu1 %v3926_v31  ;;  %v4002_v30 = vld [vmem:[#allocation8 + $0x148] ss:$16 sps:$4 sm:$0xff]   ;;  %v4007_v31 = vld [vmem:[#allocation8 + $0x164] ss:$16 sps:$4 sm:$0xff]  }
 0x1eb   :  { %1926 = vmatpush1.bf16.msra.mxu0 %v3921_v32  ;;  %2008 = vmatpush1.bf16.msra.mxu1 %v3924_v33  ;;  %v4010_v32 = vld [vmem:[#allocation8 + $0x16c] ss:$16 sps:$4 sm:$0xff]   ;;  %v4005_v33 = vld [vmem:[#allocation8 + $0x160] ss:$16 sps:$4 sm:$0xff]  }
 0x1ec   :  { %1927 = vmatprep.subr.bf16.mxu0 %v3929_v35  ;;  %2009 = vmatprep.subr.bf16.mxu1 %v3932_v36  ;;  %v4013_v35 = vld [vmem:[#allocation8 + $0x184] ss:$16 sps:$4 sm:$0xff]   ;;  %v4016_v36 = vld [vmem:[#allocation8 + $0x18c] ss:$16 sps:$4 sm:$0xff]  }
 0x1ef   :  { %1928 = vmatpush1.bf16.msra.mxu0 %v3927_v37  ;;  %2010 = vmatpush1.bf16.msra.mxu1 %v3930_v11  ;;  %v4011_v37 = vld [vmem:[#allocation8 + $0x180] ss:$16 sps:$4 sm:$0xff]   ;;  %v4014_v11 = vld [vmem:[#allocation8 + $0x188] ss:$16 sps:$4 sm:$0xff]  }
 0x1f0   :  { %1929 = vmatprep.subr.bf16.mxu0 %v3935_v39  ;;  %2011 = vmatprep.subr.bf16.mxu1 %v3938_v40  ;;  %v4022_v39 = vld [vmem:[#allocation8 + $0x1ac] ss:$16 sps:$4 sm:$0xff]   ;;  %v4017_v40 = vld [vmem:[#allocation8 + $0x1a0] ss:$16 sps:$4 sm:$0xff]  }
 0x1f3   :  { %1930 = vmatpush1.bf16.msra.mxu0 %v3933_v41  ;;  %2012 = vmatpush1.bf16.msra.mxu1 %v3936_v42  ;;  %v4020_v41 = vld [vmem:[#allocation8 + $0x1a8] ss:$16 sps:$4 sm:$0xff]   ;;  %v4025_v42 = vld [vmem:[#allocation8 + $0x1c4] ss:$16 sps:$4 sm:$0xff]  }
 0x1f4   :  { %2820 = vmatprep.subr.bf16.mxu0 %v3941_v13  ;;  %2902 = vmatprep.subr.bf16.mxu1 %v3944_v44  ;;  %v4023_v13 = vld [vmem:[#allocation8 + $0x1c0] ss:$16 sps:$4 sm:$0xff]   ;;  %v4026_v44 = vld [vmem:[#allocation8 + $0x1c8] ss:$16 sps:$4 sm:$0xff]  }
 0x1f6   :  { %1932 = vmatmul.mubr.bf16.vlgmr.msra.gmra.mrb[4].mxu0 %v1066_v47  ;;  %2014 = vmatmul.mubr.bf16.vlgmr.msra.gmra.mrb[4].mxu1 %v1066_v47  ;;  %v4029_v47 = vld [vmem:[#allocation8 + $0x1e0] ss:$16 sps:$4 sm:$0xff]  }
 0x1f7   :  { %2821 = vmatpush1.bf16.msra.mxu0 %v3939_v45  ;;  %2903 = vmatpush1.bf16.msra.mxu1 %v3942_v46  ;;  %v4031_v45 = vld [vmem:[#allocation8 + $0x1e4] ss:$16 sps:$4 sm:$0xff]   ;;  %v4034_v46 = vld [vmem:[#allocation8 + $0x1ec] ss:$16 sps:$4 sm:$0xff]  }
 0x1f8   :  { %2822 = vmatprep.subr.bf16.mxu0 %v3947_v20  ;;  %2904 = vmatprep.subr.bf16.mxu1 %v3950_v48  ;;  %v4032_v20 = vld [vmem:[#allocation8 + $0x1e8] ss:$16 sps:$4 sm:$0xff]   ;;  %v4037_v48 = vld [vmem:[#allocation8 + $0x204] ss:$16 sps:$4 sm:$0xff]  }
 0x1fb   :  { %2823 = vmatpush1.bf16.msra.mxu0 %v3945_v49  ;;  %2905 = vmatpush1.bf16.msra.mxu1 %v3948_v50  ;;  %v4040_v49 = vld [vmem:[#allocation8 + $0x20c] ss:$16 sps:$4 sm:$0xff]   ;;  %v4438_v50 = vld [vmem:[%s4481_s4] sm:$0xf] }
 0x1fc   :  { %2824 = vmatprep.subr.bf16.mxu0 %v3953_v51  ;;  %2906 = vmatprep.subr.bf16.mxu1 %v3956_v52  ;;  %v1201_v51 = vrot.slane %v4438_v50, %v4408_v12  ;;  %v1205_v52 = vrot.slane %v4438_v50, %v4416_v14 }
 0x1ff   :  { %2825 = vmatpush1.bf16.msra.mxu0 %v3951_v53  ;;  %2907 = vmatpush1.bf16.msra.mxu1 %v3954_v54  ;;  %v1213_v53 = vrot.slane %v4438_v50, %v4419_v15 }
 0x200   :  { %2826 = vmatprep.subr.bf16.mxu0 %v3959_v55  ;;  %2908 = vmatprep.subr.bf16.mxu1 %v3962_v56 }
 0x203   :  { %2827 = vmatpush1.bf16.msra.mxu0 %v3957_v57  ;;  %2909 = vmatpush1.bf16.msra.mxu1 %v3960_v58 }
 0x204   :  { %2828 = vmatprep.subr.bf16.mxu0 %v3965_v59  ;;  %2910 = vmatprep.subr.bf16.mxu1 %v3968_v60 }
 0x207   :  { %2829 = vmatpush1.bf16.msra.mxu0 %v3963_v61  ;;  %2911 = vmatpush1.bf16.msra.mxu1 %v3966_v62 }
 0x208   :  { %2830 = vmatprep.subr.bf16.mxu0 %v3971_v63  ;;  %2912 = vmatprep.subr.bf16.mxu1 %v3974_v0 }
 0x20b   :  { %2831 = vmatpush1.bf16.msra.mxu0 %v3969_v1  ;;  %2913 = vmatpush1.bf16.msra.mxu1 %v3972_v2 }
 0x20c   :  { %2832 = vmatprep.subr.bf16.mxu0 %v3977_v3  ;;  %2914 = vmatprep.subr.bf16.mxu1 %v3980_v4 }
 0x20f   :  { %2833 = vmatpush1.bf16.msra.mxu0 %v3975_v5  ;;  %2915 = vmatpush1.bf16.msra.mxu1 %v3978_v6  ;;  %v4035_v5 = vld [vmem:[#allocation8 + $0x200] ss:$16 sps:$4 sm:$0xff]   ;;  %v4038_v6 = vld [vmem:[#allocation8 + $0x208] ss:$16 sps:$4 sm:$0xff]  }
 0x210   :  { %2834 = vmatprep.subr.bf16.mxu0 %v3983_v7  ;;  %2916 = vmatprep.subr.bf16.mxu1 %v3986_v8  ;;  %v4043_v8 = vld [vmem:[#allocation8 + $0x224] ss:$16 sps:$4 sm:$0xff]  }
 0x213   :  { %2835 = vmatpush1.bf16.msra.mxu0 %v3981_v9  ;;  %2917 = vmatpush1.bf16.msra.mxu1 %v3984_v16  ;;  %v4046_v9 = vld [vmem:[#allocation8 + $0x22c] ss:$16 sps:$4 sm:$0xff]  }
 0x214   :  { %2836 = vmatprep.subr.bf16.mxu0 %v3989_v17  ;;  %2918 = vmatprep.subr.bf16.mxu1 %v3992_v18  ;;  %v4041_v17 = vld [vmem:[#allocation8 + $0x220] ss:$16 sps:$4 sm:$0xff]   ;;  %v4044_v18 = vld [vmem:[#allocation8 + $0x228] ss:$16 sps:$4 sm:$0xff]  }
 0x217   :  { %2837 = vmatpush1.bf16.msra.mxu0 %v3987_v19  ;;  %2919 = vmatpush1.bf16.msra.mxu1 %v3990_v21  ;;  %v4049_v19 = vld [vmem:[#allocation8 + $0x244] ss:$16 sps:$4 sm:$0xff]   ;;  %v4052_v21 = vld [vmem:[#allocation8 + $0x24c] ss:$16 sps:$4 sm:$0xff]  }
 0x218   :  { %2838 = vmatprep.subr.bf16.mxu0 %v3995_v22  ;;  %2920 = vmatprep.subr.bf16.mxu1 %v3998_v23  ;;  %v4047_v22 = vld [vmem:[#allocation8 + $0x240] ss:$16 sps:$4 sm:$0xff]   ;;  %v4050_v23 = vld [vmem:[#allocation8 + $0x248] ss:$16 sps:$4 sm:$0xff]  }
 0x21b   :  { %2839 = vmatpush1.bf16.msra.mxu0 %v3993_v24  ;;  %2921 = vmatpush1.bf16.msra.mxu1 %v3996_v25  ;;  %v4055_v24 = vld [vmem:[#allocation8 + $0x264] ss:$16 sps:$4 sm:$0xff]   ;;  %v4058_v25 = vld [vmem:[#allocation8 + $0x26c] ss:$16 sps:$4 sm:$0xff]  }
 0x21c   :  { %2840 = vmatprep.subr.bf16.mxu0 %v4001_v26  ;;  %2922 = vmatprep.subr.bf16.mxu1 %v4004_v27  ;;  %v4053_v26 = vld [vmem:[#allocation8 + $0x260] ss:$16 sps:$4 sm:$0xff]   ;;  %v4056_v27 = vld [vmem:[#allocation8 + $0x268] ss:$16 sps:$4 sm:$0xff]  }
 0x21f   :  { %2841 = vmatpush1.bf16.msra.mxu0 %v3999_v28  ;;  %2923 = vmatpush1.bf16.msra.mxu1 %v4002_v30  ;;  %v4061_v28 = vld [vmem:[#allocation8 + $0x284] ss:$16 sps:$4 sm:$0xff]   ;;  %v4064_v30 = vld [vmem:[#allocation8 + $0x28c] ss:$16 sps:$4 sm:$0xff]  }
 0x220   :  { %2842 = vmatprep.subr.bf16.mxu0 %v4007_v31  ;;  %2924 = vmatprep.subr.bf16.mxu1 %v4010_v32  ;;  %v4059_v31 = vld [vmem:[#allocation8 + $0x280] ss:$16 sps:$4 sm:$0xff]   ;;  %v4062_v32 = vld [vmem:[#allocation8 + $0x288] ss:$16 sps:$4 sm:$0xff]  }
 0x223   :  { %2843 = vmatpush1.bf16.msra.mxu0 %v4005_v33  ;;  %2925 = vmatpush1.bf16.msra.mxu1 %v4008_v34  ;;  %v4067_v33 = vld [vmem:[#allocation8 + $0x2a4] ss:$16 sps:$4 sm:$0xff]   ;;  %v4070_v34 = vld [vmem:[#allocation8 + $0x2ac] ss:$16 sps:$4 sm:$0xff]  }
 0x224   :  { %2844 = vmatprep.subr.bf16.mxu0 %v4013_v35  ;;  %2926 = vmatprep.subr.bf16.mxu1 %v4016_v36  ;;  %v4065_v35 = vld [vmem:[#allocation8 + $0x2a0] ss:$16 sps:$4 sm:$0xff]   ;;  %v4068_v36 = vld [vmem:[#allocation8 + $0x2a8] ss:$16 sps:$4 sm:$0xff]  }
 0x227   :  { %2845 = vmatpush1.bf16.msra.mxu0 %v4011_v37  ;;  %2927 = vmatpush1.bf16.msra.mxu1 %v4014_v11  ;;  %v4073_v37 = vld [vmem:[#allocation8 + $0x2c4] ss:$16 sps:$4 sm:$0xff]   ;;  %v4076_v11 = vld [vmem:[#allocation8 + $0x2cc] ss:$16 sps:$4 sm:$0xff]  }
 0x228   :  { %2846 = vmatprep.subr.bf16.mxu0 %v4019_v38  ;;  %2928 = vmatprep.subr.bf16.mxu1 %v4022_v39  ;;  %v4071_v38 = vld [vmem:[#allocation8 + $0x2c0] ss:$16 sps:$4 sm:$0xff]   ;;  %v4074_v39 = vld [vmem:[#allocation8 + $0x2c8] ss:$16 sps:$4 sm:$0xff]  }
 0x22b   :  { %2847 = vmatpush1.bf16.msra.mxu0 %v4017_v40  ;;  %2929 = vmatpush1.bf16.msra.mxu1 %v4020_v41  ;;  %v4079_v40 = vld [vmem:[#allocation8 + $0x2e4] ss:$16 sps:$4 sm:$0xff]   ;;  %v4082_v41 = vld [vmem:[#allocation8 + $0x2ec] ss:$16 sps:$4 sm:$0xff]  }
 0x22c   :  { %2848 = vmatprep.subr.bf16.mxu0 %v4025_v42  ;;  %2930 = vmatprep.subr.bf16.mxu1 %v4028_v43  ;;  %v4077_v42 = vld [vmem:[#allocation8 + $0x2e0] ss:$16 sps:$4 sm:$0xff]   ;;  %v4080_v43 = vld [vmem:[#allocation8 + $0x2e8] ss:$16 sps:$4 sm:$0xff]  }
 0x22f   :  { %2849 = vmatpush1.bf16.msra.mxu0 %v4023_v13  ;;  %2931 = vmatpush1.bf16.msra.mxu1 %v4026_v44  ;;  %v4085_v13 = vld [vmem:[#allocation8 + $0x304] ss:$16 sps:$4 sm:$0xff]   ;;  %v4088_v44 = vld [vmem:[#allocation8 + $0x30c] ss:$16 sps:$4 sm:$0xff]  }
 0x230   :  { %2850 = vmatprep.subr.bf16.mxu0 %v4031_v45  ;;  %2932 = vmatprep.subr.bf16.mxu1 %v4034_v46  ;;  %v4083_v45 = vld [vmem:[#allocation8 + $0x300] ss:$16 sps:$4 sm:$0xff]   ;;  %v4086_v46 = vld [vmem:[#allocation8 + $0x308] ss:$16 sps:$4 sm:$0xff]  }
 0x233   :  { %2851 = vmatpush1.bf16.msra.mxu0 %v4029_v47  ;;  %2933 = vmatpush1.bf16.msra.mxu1 %v4032_v20  ;;  %v4091_v47 = vld [vmem:[#allocation8 + $0x324] ss:$16 sps:$4 sm:$0xff]   ;;  %v4094_v20 = vld [vmem:[#allocation8 + $0x32c] ss:$16 sps:$4 sm:$0xff]  }
 0x234   :  { %2861 = vmatprep.subr.bf16.mxu0 %v4037_v48  ;;  %2943 = vmatprep.subr.bf16.mxu1 %v4040_v49  ;;  %v4089_v48 = vld [vmem:[#allocation8 + $0x320] ss:$16 sps:$4 sm:$0xff]   ;;  %v4092_v49 = vld [vmem:[#allocation8 + $0x328] ss:$16 sps:$4 sm:$0xff]  }
 0x2c9   :  { %v1933_v54 = vpop.f32.mrb[4].mxu0  ;;  %v4446_v55 = vpop.f32.mrb[4].mxu1 }
 0x2ca   :  { %v3513_v56 = vadd.f32 %v1933_v54, %v1201_v51  ;;  %v1935_v57 = vpop.f32.mrb[5].mxu0  ;;  %v2017_v58 = vpop.f32.mrb[5].mxu1  ;;  %v4097_v51 = vld [vmem:[#allocation8 + $0x344] ss:$16 sps:$4 sm:$0xff]   ;;  %v4098_v54 = vld [vmem:[#allocation8 + $0x348] ss:$16 sps:$4 sm:$0xff]  }
 0x2cb   :  { %v3514_v59 = vadd.f32 %v1935_v57, %v1205_v52  ;;  %v3516_v60 = vadd.f32 %v2017_v58, %v1213_v53  ;;  %v1937_v61 = vpop.f32.mrb[6].mxu0  ;;  %v2019_v62 = vpop.f32.mrb[6].mxu1  ;;  %v4100_v52 = vld [vmem:[#allocation8 + $0x34c] ss:$16 sps:$4 sm:$0xff]   ;;  %v4095_v53 = vld [vmem:[#allocation8 + $0x340] ss:$16 sps:$4 sm:$0xff]  }
 0x2cc   :  { %v2022_v63 = vmax.f32 %v3513_v56, 0.0  ;;  %v1938_v0 = vpop.f32.mrb[7].mxu0  ;;  %v2020_v1 = vpop.f32.mrb[7].mxu1  ;;  %v4103_v56 = vld [vmem:[#allocation8 + $0x364] ss:$16 sps:$4 sm:$0xff]  }
 0x2cd   :  { %v2023_v2 = vmax.f32 %v3514_v59, 0.0  ;;  %v2025_v3 = vmax.f32 %v3516_v60, 0.0  ;;  %v4106_v57 = vld [vmem:[#allocation8 + $0x36c] ss:$16 sps:$4 sm:$0xff]   ;;  %v4101_v58 = vld [vmem:[#allocation8 + $0x360] ss:$16 sps:$4 sm:$0xff]  }
 0x2ce   :  { %v2026_v7 = vpack.c.bf16 %v2022_v63, %v2022_v63  ;;  %v4104_v59 = vld [vmem:[#allocation8 + $0x368] ss:$16 sps:$4 sm:$0xff]   ;;  %v4109_v60 = vld [vmem:[#allocation8 + $0x384] ss:$16 sps:$4 sm:$0xff]   ;;  %v4112_v61 = vld [vmem:[#allocation8 + $0x38c] ss:$16 sps:$4 sm:$0xff]  }
 0x2cf   :  { %v2027_v4 = vpack.c.bf16 %v2023_v2, %v2023_v2  ;;  %v2029_v16 = vpack.c.bf16 %v2025_v3, %v2025_v3  ;;  %v4107_v62 = vld [vmem:[#allocation8 + $0x380] ss:$16 sps:$4 sm:$0xff]   ;;  %v4110_v63 = vld [vmem:[#allocation8 + $0x388] ss:$16 sps:$4 sm:$0xff]   ;;  %v4115_v0 = vld [vmem:[#allocation8 + $0x3a4] ss:$16 sps:$4 sm:$0xff]  }
 0x2d0   :  { %v4118_v1 = vld [vmem:[#allocation8 + $0x3ac] ss:$16 sps:$4 sm:$0xff]   ;;  %v4113_v2 = vld [vmem:[#allocation8 + $0x3a0] ss:$16 sps:$4 sm:$0xff]   ;;  %v4116_v3 = vld [vmem:[#allocation8 + $0x3a8] ss:$16 sps:$4 sm:$0xff]  }
 0x2d1   :  { %2852 = vmatprep.mubr.bf16.mxu0 %v2027_v4  ;;  %2934 = vmatprep.mubr.bf16.mxu1 %v2027_v4  ;;  %v1209_v4 = vrot.slane %v4438_v50, %v4430_v29 }
 0x2d2   :  { %2853 = vmatmul.mubr.bf16.vlgmr.msra.gmra.mrb[8].mxu0 %v2026_v7  ;;  %2935 = vmatmul.mubr.bf16.vlgmr.msra.gmra.mrb[8].mxu1 %v2026_v7  ;;  %v4119_v7 = vld [vmem:[#allocation8 + $0x3c0] ss:$16 sps:$4 sm:$0xff]  }
 0x2d3   :  { %2862 = vmatpush1.bf16.msra.mxu0 %v4035_v5  ;;  %2944 = vmatpush1.bf16.msra.mxu1 %v4038_v6  ;;  %v4121_v5 = vld [vmem:[#allocation8 + $0x3c4] ss:$16 sps:$4 sm:$0xff]   ;;  %v4124_v6 = vld [vmem:[#allocation8 + $0x3cc] ss:$16 sps:$4 sm:$0xff]  }
 0x2d4   :  { %2893 = vmatprep.mubr.bf16.mxu0 %v2029_v16  ;;  %2975 = vmatprep.mubr.bf16.mxu1 %v2029_v16  ;;  %v4127_v16 = vld [vmem:[#allocation8 + $0x3e4] ss:$16 sps:$4 sm:$0xff]  }
 0x2d5   :  { %2863 = vmatprep.subr.bf16.mxu0 %v4043_v8  ;;  %2945 = vmatprep.subr.bf16.mxu1 %v4046_v9  ;;  %v4122_v8 = vld [vmem:[#allocation8 + $0x3c8] ss:$16 sps:$4 sm:$0xff]   ;;  %v3515_v9 = vadd.f32 %v4446_v55, %v1209_v4  ;;  %v2992_v55 = vld [vmem:[%s4484_s7] sm:$0xff] }
 0x2d7   :  { %2864 = vmatpush1.bf16.msra.mxu0 %v4041_v17  ;;  %2946 = vmatpush1.bf16.msra.mxu1 %v4044_v18  ;;  %v4130_v17 = vld [vmem:[#allocation8 + $0x3ec] ss:$16 sps:$4 sm:$0xff]   ;;  %v4125_v18 = vld [vmem:[#allocation8 + $0x3e0] ss:$16 sps:$4 sm:$0xff]  }
 0x2d8   :  { %2865 = vmatprep.subr.bf16.mxu0 %v4049_v19  ;;  %2947 = vmatprep.subr.bf16.mxu1 %v4052_v21  ;;  %v4128_v19 = vld [vmem:[#allocation8 + $0x3e8] ss:$16 sps:$4 sm:$0xff]   ;;  %v2024_v21 = vmax.f32 %v3515_v9, 0.0 }
 0x2da   :  { %v2028_v50 = vpack.c.bf16 %v2024_v21, %v2024_v21 }
 0x2db   :  { %2866 = vmatpush1.bf16.msra.mxu0 %v4047_v22  ;;  %2948 = vmatpush1.bf16.msra.mxu1 %v4050_v23  ;;  %v2993_v22 = vld [vmem:[%s4484_s7 + $0x8] sm:$0xff]  ;;  %v3506_v23 = vcombine.high %v2992_v55, %v2992_v55 }
 0x2dc   :  { %2867 = vmatprep.subr.bf16.mxu0 %v4055_v24  ;;  %2949 = vmatprep.subr.bf16.mxu1 %v4058_v25  ;;  %v3508_v24 = vcombine.high %v2993_v22, %v2993_v22  ;;  %v3505_v25 = vcombine.low %v2992_v55, %v2992_v55 }
 0x2df   :  { %2868 = vmatpush1.bf16.msra.mxu0 %v4053_v26  ;;  %2950 = vmatpush1.bf16.msra.mxu1 %v4056_v27  ;;  %v3507_v26 = vcombine.low %v2993_v22, %v2993_v22  ;;  %v2158_v27 = vld [vmem:[#allocation10] sm:$0xf] }
 0x2e0   :  { %2869 = vmatprep.subr.bf16.mxu0 %v4061_v28  ;;  %2951 = vmatprep.subr.bf16.mxu1 %v4064_v30  ;;  %v2163_v28 = vrot.slane %v2158_v27, %v4408_v12  ;;  %v2171_v30 = vrot.slane %v2158_v27, %v4430_v29 }
 0x2e3   :  { %2870 = vmatpush1.bf16.msra.mxu0 %v4059_v31  ;;  %2952 = vmatpush1.bf16.msra.mxu1 %v4062_v32  ;;  %v2167_v31 = vrot.slane %v2158_v27, %v4416_v14  ;;  %v2175_v32 = vrot.slane %v2158_v27, %v4419_v15 }
 0x2e4   :  { %2871 = vmatprep.subr.bf16.mxu0 %v4067_v33  ;;  %2953 = vmatprep.subr.bf16.mxu1 %v4070_v34 }
 0x2e7   :  { %2872 = vmatpush1.bf16.msra.mxu0 %v4065_v35  ;;  %2954 = vmatpush1.bf16.msra.mxu1 %v4068_v36 }
 0x2e8   :  { %2873 = vmatprep.subr.bf16.mxu0 %v4073_v37  ;;  %2955 = vmatprep.subr.bf16.mxu1 %v4076_v11 }
 0x2eb   :  { %2874 = vmatpush1.bf16.msra.mxu0 %v4071_v38  ;;  %2956 = vmatpush1.bf16.msra.mxu1 %v4074_v39 }
 0x2ec   :  { %2875 = vmatprep.subr.bf16.mxu0 %v4079_v40  ;;  %2957 = vmatprep.subr.bf16.mxu1 %v4082_v41 }
 0x2ef   :  { %2876 = vmatpush1.bf16.msra.mxu0 %v4077_v42  ;;  %2958 = vmatpush1.bf16.msra.mxu1 %v4080_v43 }
 0x2f0   :  { %2877 = vmatprep.subr.bf16.mxu0 %v4085_v13  ;;  %2959 = vmatprep.subr.bf16.mxu1 %v4088_v44 }
 0x2f3   :  { %2878 = vmatpush1.bf16.msra.mxu0 %v4083_v45  ;;  %2960 = vmatpush1.bf16.msra.mxu1 %v4086_v46 }
 0x2f4   :  { %2879 = vmatprep.subr.bf16.mxu0 %v4091_v47  ;;  %2961 = vmatprep.subr.bf16.mxu1 %v4094_v20  ;;  %v3504_v47 = vld [vmem:[%s4485_s8] ss:$0 sm:$0xff]  ;;  %s4247_s8 = scalar_lea.vmem %s3110_s13, 128 }
 0x2f5   :  { %p4248_p12 = scmp.ne.s32.totalorder %s3110_s13, %s4247_s8  ;;  %p4253_p0 = scmp.lt.s32.totalorder %s4247_s8, %s4247_s8 }
 0x2f7   :  { %2880 = vmatpush1.bf16.msra.mxu0 %v4089_v48  ;;  %2962 = vmatpush1.bf16.msra.mxu1 %v4092_v49  ;;  %p4254_p1 = por %p4253_p0, %p4252_p13 }
 0x2f8   :  { %2881 = vmatprep.subr.bf16.mxu0 %v4097_v51  ;;  %2963 = vmatprep.subr.bf16.mxu1 %v4100_v52 }
 0x2f9   :  { %p4255_p2 = pnand %p4254_p1, %p4248_p12 }
 0x2fb   :  { %2882 = vmatpush1.bf16.msra.mxu0 %v4095_v53  ;;  %2964 = vmatpush1.bf16.msra.mxu1 %v4098_v54 }
 0x2fc   :  { %2883 = vmatprep.subr.bf16.mxu0 %v4103_v56  ;;  %2965 = vmatprep.subr.bf16.mxu1 %v4106_v57 }
 0x2ff   :  { %2884 = vmatpush1.bf16.msra.mxu0 %v4101_v58  ;;  %2966 = vmatpush1.bf16.msra.mxu1 %v4104_v59  ;;  %v3096_v59 = vand.u32 127, %v236_v10 }
 0x300   :  { %2885 = vmatprep.subr.bf16.mxu0 %v4109_v60  ;;  %2967 = vmatprep.subr.bf16.mxu1 %v4112_v61 }
 0x301   :  { %vm3097_vm0 = vcmp.eq.s32.totalorder %v3096_v59, 0 }
 0x303   :  { %2886 = vmatpush1.bf16.msra.mxu0 %v4107_v62  ;;  %2968 = vmatpush1.bf16.msra.mxu1 %v4110_v63 }
 0x304   :  { %2887 = vmatprep.subr.bf16.mxu0 %v4115_v0  ;;  %2969 = vmatprep.subr.bf16.mxu1 %v4118_v1 }
 0x307   :  { %2888 = vmatpush1.bf16.msra.mxu0 %v4113_v2  ;;  %2970 = vmatpush1.bf16.msra.mxu1 %v4116_v3 }
 0x308   :  { %2889 = vmatprep.subr.bf16.mxu0 %v4121_v5  ;;  %2971 = vmatprep.subr.bf16.mxu1 %v4124_v6 }
 0x30b   :  { %2890 = vmatpush1.bf16.msra.mxu0 %v4119_v7  ;;  %2972 = vmatpush1.bf16.msra.mxu1 %v4122_v8 }
 0x30c   :  { %2891 = vmatprep.subr.bf16.mxu0 %v4127_v16  ;;  %2973 = vmatprep.subr.bf16.mxu1 %v4130_v17 }
 0x30f   :  { %2892 = vmatpush1.bf16.msra.mxu0 %v4125_v18  ;;  %2974 = vmatpush1.bf16.msra.mxu1 %v4128_v19 }
 0x310   :  { %3015 = vmatprep.subr.bf16.mxu1 %v3506_v23  ;;  %3055 = vmatprep.subr.bf16.mxu0 %v3508_v24 }
 0x312   :  { %2894 = vmatmul.mubr.bf16.vlgmr.msra.gmra.mrb[8].mxu0 %v2028_v50  ;;  %2976 = vmatmul.mubr.bf16.vlgmr.msra.gmra.mrb[8].mxu1 %v2028_v50 }
 0x318   :  { %3016 = vmatpush1.bf16.xpose.msra.mxu1 %v3505_v25  ;;  %3056 = vmatpush1.bf16.xpose.msra.mxu0 %v3507_v26 }
 0x3e5   :  { %v2895_v33 = vpop.f32.mrb[8].mxu0  ;;  %v2977_v34 = vpop.f32.mrb[8].mxu1 }
 0x3e6   :  { %v3517_v35 = vadd.f32 %v2895_v33, %v2163_v28  ;;  %v3519_v36 = vadd.f32 %v2977_v34, %v2171_v30  ;;  %v2897_v37 = vpop.f32.mrb[9].mxu0  ;;  %v2979_v11 = vpop.f32.mrb[9].mxu1 }
 0x3e7   :  { %v3518_v38 = vadd.f32 %v2897_v37, %v2167_v31  ;;  %v3520_v39 = vadd.f32 %v2979_v11, %v2175_v32  ;;  %v2899_v40 = vpop.f32.mrb[10].mxu0  ;;  %v2981_v41 = vpop.f32.mrb[10].mxu1 }
 0x3e8   :  { %v2984_v42 = vmax.f32 %v3517_v35, 0.0  ;;  %v2986_v43 = vmax.f32 %v3519_v36, 0.0  ;;  %v2900_v13 = vpop.f32.mrb[11].mxu0  ;;  %v2982_v12 = vpop.f32.mrb[11].mxu1 }
 0x3e9   :  { %v2985_v44 = vmax.f32 %v3518_v38, 0.0  ;;  %v2987_v29 = vmax.f32 %v3520_v39, 0.0 }
 0x3ea   :  { %v2988_v46 = vpack.c.bf16 %v2984_v42, %v2984_v42  ;;  %v2990_v15 = vpack.c.bf16 %v2986_v43, %v2986_v43 }
 0x3eb   :  { %v2989_v45 = vpack.c.bf16 %v2985_v44, %v2985_v44  ;;  %v2991_v14 = vpack.c.bf16 %v2987_v29, %v2987_v29 }
 0x3ed   :  { %3047 = vmatprep.mubr.bf16.mxu1 %v2989_v45  ;;  %3087 = vmatprep.mubr.bf16.mxu0 %v2991_v14 }
 0x3ee   :  { %3048 = vmatmul.mubr.bf16.vlgmr.msra.gmra.mrb[12].mxu1 %v2988_v46  ;;  %3088 = vmatmul.mubr.bf16.vlgmr.msra.gmra.mrb[12].mxu0 %v2990_v15 }
 0x4c1   :  { %v3049_v20 = vpop.f32.mrb[12].mxu1  ;;  %v3089_v48 = vpop.f32.mrb[12].mxu0 }
 0x4c2   :  { %v3050_v49 = vadd.f32 %v3504_v47, %v3049_v20  ;;  %v3051_v51 = vpop.f32.mrb[13].mxu1  ;;  %v3091_v52 = vpop.f32.mrb[13].mxu0 }
 0x4c3   :  { %v3052_v53 = vpop.f32.mrb[14].mxu1  ;;  %v3092_v54 = vpop.f32.mrb[14].mxu0 }
 0x4c4   :  { %v3090_v56 = vadd.f32 %v3089_v48, %v3050_v49  ;;  %v3053_v57 = vpop.f32.mrb[15].mxu1  ;;  %v3093_v58 = vpop.f32.mrb[15].mxu0 }
 0x4c6   :  { %4135 = vtanh.f32 %v3090_v56  ;;  %v3099_v60 = vmax.f32 %v3090_v56, 0.0 }
 0x4d0   :  { %v4136_v61 = vpop.eup %4135 }
 0x4d1   :  { %v3100_v62 = vsel %vm3097_vm0, %v4136_v61, %v3099_v60 }
 0x4d2   :  { %3102 = vst.msk [vmem:[#allocation11] sm:$0xff] %vm3101_vm1, %v3100_v62 }
 0x4d3   :  { %4258 = shalt.err (!%p4255_p2)
}
 0x4d4   :  { %s4259_s14 = scalar_lea.hbm %s4486_s9, 128 }
 0x4d5   :  { %p4260_p3 = scmp.ne.s32.totalorder %s4486_s9, %s4259_s14  ;;  %p4263_p4 = scmp.lt.u32.totalorder %s4259_s14, %s4486_s9 }
 0x4d7   :  { %p4265_p5 = pnand %p4263_p4, %p4260_p3 }
 0x4d9   :  { %4268 = shalt.err (!%p4265_p5)
}
 0x4da   :  { %3112 = dma.vmem_to_hbm [thread:$0]  %s3110_s13, 128, %s4486_s9, [#allocation4]  }
 0x4db   :  { %4275 = dma.done.wait [#allocation4], 128  }
 0x4dc   :  { %4276 = vsyncadd [#allocation4], 4294967168 }
 0x4dd   :  { %3116 = vsyncpa [#allocation3], 1 }
 0x4de   :  { %3117 = vsyncpa [#allocation6], 1 }
 0x4df   :  { %3118 = vsyncpa [#allocation9], 1 }
 0x4e0   :  { %3119 = vsyncpa [#allocation4], 1 }

</bundles_post_ra>
